<compile_context>
chip_gen: v7x
topology: tpu7x:2x2x1
jax: 0.10.0
libtpu: 0.0.40
codegen_flags: <defaults>
</compile_context>

<pallas_src>
import functools

import jax
import jax.numpy as jnp
from jax import lax
from jax.experimental import pallas as pl
from jax.experimental.pallas import tpu as pltpu  # noqa: F401  (TPU-specific tuning hooks)


# ---------------------------------------------------------------------------
# in-kernel helpers (traced inside the Pallas kernel body)
# ---------------------------------------------------------------------------
def _l1_normalize(x, axis):
    # matches torch.nn.functional.normalize(..., p=1, eps=1e-12)
    denom = jnp.maximum(jnp.sum(jnp.abs(x), axis=axis, keepdims=True), 1e-12)
    return x * pl.reciprocal(denom, approx=True)


def _l2_normalize(x, axis):
    # matches torch.nn.functional.normalize(..., p=2, eps=1e-12)
    ns = jnp.sum(x * x, axis=axis, keepdims=True)
    return x * lax.rsqrt(jnp.maximum(ns, 1e-24))


def _sinkhorn_t(protos_mm, feats_mm, inv_eps, n_iters):
    """Sinkhorn-Knopp (PALM.sinkhorn) in transposed (P, N) layout.

    Returns (Q, simT): Q is torch's Q with shape (K=P, B=N) (i.e. already the
    transpose of what torch's sinkhorn() returns), and simT is the f32
    similarity matrix (features @ protos.T).T, reused by the caller as logits.
    """
    simT = lax.dot_general(protos_mm, feats_mm, (((1,), (1,)), ((), ())),
                           preferred_element_type=jnp.float32)          # (P, N)
    scaled = simT * inv_eps
    # Global max-shift: exactly cancelled by the global-sum normalization below,
    # but prevents exp overflow.
    # TODO(synk): torch has an isinf(sum_Q) branch referencing an undefined
    # `self.ws`; it is unreachable/broken upstream and replaced by this shift.
    scaled = scaled - jnp.max(scaled, keepdims=True)
    Q = jnp.exp(scaled)
    Q = Q * pl.reciprocal(jnp.sum(Q, keepdims=True), approx=True)
    inv_k = 1.0 / Q.shape[0]                       # 1/K (n_protos)
    inv_b = 1.0 / Q.shape[1]                       # 1/B (n_rows)
    for _ in range(n_iters):
        Q = _l1_normalize(Q, axis=1) * inv_k       # torch: rows of Q (dim=1), /K
        Q = _l1_normalize(Q, axis=0) * inv_b       # torch: cols of Q (dim=0), /B
    Q = Q * jnp.float32(Q.shape[1])                # * B
    return Q, simT


def _topk_mask_axis0(x, k):
    """Binary mask of the k largest entries per column (ties -> lowest row)."""
    rows = lax.broadcasted_iota(jnp.int32, x.shape, 0)
    sentinel = jnp.int32(x.shape[0])
    work = x
    mask = jnp.zeros_like(x)
    for _ in range(k):                             # k is small & static: unrolled
        col_max = jnp.max(work, axis=0, keepdims=True)
        cand = work == col_max
        first = jnp.min(jnp.where(cand, rows, sentinel), axis=0, keepdims=True)
        sel = rows == first
        mask = jnp.where(sel, 1.0, mask)
        work = jnp.where(sel, jnp.float32(-1e30), work)
    return mask


# ---------------------------------------------------------------------------
# the Pallas kernel: full PALM.forward
# ---------------------------------------------------------------------------
def _palm_kernel(labels_ref, features_ref, protos_ref, counts_ref,
                 new_protos_ref, new_counts_ref, scalars_ref,
                 *, k, num_classes, inv_temp, inv_eps, proto_m, lambda_pcon,
                 sinkhorn_iterations, matmul_dtype):
    labels = labels_ref[...]                  # (1, N) int32 anchor labels
    f = features_ref[...]                     # (N, D) f32
    protos = protos_ref[...]                  # (P, D) f32
    counts = counts_ref[...]                  # (P, C) f32

    p = protos.shape[0]
    c = num_classes
    f_mm = f.astype(matmul_dtype)             # MXU operands; accumulate in f32

    # ---- class masks built in-kernel from the label row (no mask DMAs) ------
    # proto p has class p % c (torch: arange(C).repeat(cache_size)).
    pr = lax.broadcasted_iota(jnp.int32, (p, 1), 0)                      # (P, 1)
    pc = lax.broadcasted_iota(jnp.int32, (1, p), 1)                      # (1, P)
    proto_lab_col = pr % c                                               # (P, 1)
    maskT = jnp.where(proto_lab_col == labels, 1.0, 0.0)                 # (P, N)
    class_col = lax.broadcasted_iota(jnp.int32, (c, 1), 0)               # (C, 1)
    onehotT = jnp.where(class_col == labels, 1.0, 0.0)                   # (C, N)
    mask_pp = jnp.where(proto_lab_col == (pc % c), 1.0, 0.0)             # (P, P)
    logits_mask = jnp.where(pr != pc, 1.0, 0.0)                          # (P, P)

    # ---------------- mle_loss, phase 1: EMA prototype update ----------------
    Q, _ = _sinkhorn_t(protos.astype(matmul_dtype), f_mm, inv_eps,
                       sinkhorn_iterations)                              # (P, N)
    um = maskT * Q
    if k > 0:
        tkm = _topk_mask_axis0(um, k)          # torch: topk over dim=1 of (N, P)
        um = _l1_normalize(_l1_normalize(tkm * um, axis=0), axis=1)
    else:
        tkm = None
        um = _l1_normalize(_l1_normalize(um, axis=0), axis=1)

    um_mm = um.astype(matmul_dtype)
    # update_features = update_mask.T @ features             -> (P, D)
    upd_feat = lax.dot_general(um_mm, f_mm, (((1,), (0,)), ((), ())),
                               preferred_element_type=jnp.float32)
    # proto_class_counts += update_mask.T @ one_hot(targets)  -> (P, C)
    new_counts = counts + lax.dot_general(
        um_mm, onehotT.astype(matmul_dtype), (((1,), (1,)), ((), ())),
        preferred_element_type=jnp.float32)
    protos_new = _l2_normalize(proto_m * protos + (1.0 - proto_m) * upd_feat,
                               axis=1)
    new_protos_ref[...] = protos_new
    new_counts_ref[...] = new_counts

    # -------- mle_loss, phase 2: loss against updated prototypes -------------
    protos_new_mm = protos_new.astype(matmul_dtype)
    Q2, simT = _sinkhorn_t(protos_new_mm, f_mm, inv_eps, sinkhorn_iterations)
    logitsT = simT * inv_temp                  # reuse Sinkhorn similarity: (P, N)
    if k > 0:
        # torch re-takes topk of the (doubly L1-normalized) update_mask here; its
        # support is exactly the k strictly-positive entries already picked by
        # `tkm` (Q > 0 everywhere, cache_size >= k), so the masks are identical.
        loss_maskT = _l1_normalize(tkm * (maskT * Q2), axis=0)
        maskedT = loss_maskT * logitsT
    else:
        maskedT = _l1_normalize(Q2 * maskT, axis=0) * logitsT
    pos = jnp.sum(maskedT, axis=0, keepdims=True)                        # (1, N)
    # log-sum-exp over prototypes (torch dim=1) with a mathematically exact shift
    lmax = jnp.max(logitsT, axis=0, keepdims=True)
    neg = lmax + jnp.log(jnp.sum(jnp.exp(logitsT - lmax), axis=0,
                                 keepdims=True))                         # (1, N)
    # torch broadcasts pos(N,) - neg(N,1) -> (N,N); its mean == mean(pos)-mean(neg)
    mle = -(jnp.mean(pos, keepdims=True) - jnp.mean(neg, keepdims=True))  # (1, 1)

    # ---------------- proto_contra -------------------------------------------
    # protos_new is already L2-normalized (normalization is idempotent).
    adc = lax.dot_general(protos_new_mm, protos_new_mm,
                          (((1,), (1,)), ((), ())),
                          preferred_element_type=jnp.float32) * 2.0      # / 0.5
    plog = adc - jnp.max(adc, axis=1, keepdims=True)
    m_pp = mask_pp * logits_mask
    ppos = jnp.sum(_l1_normalize(m_pp, axis=1) * plog, axis=1, keepdims=True)
    pneg = jnp.log(jnp.sum(logits_mask * jnp.exp(plog), axis=1, keepdims=True))
    pcon = -jnp.mean(ppos - pneg, keepdims=True)                         # (1, 1)

    if lambda_pcon > 0:
        g_dis = lambda_pcon * pcon
        total = mle + g_dis
    else:
        g_dis = jnp.zeros_like(pcon)
        total = mle

    # packed lane-dense scalar output: [total, mle, lambda_pcon * proto_contra, 0...]
    lane = lax.broadcasted_iota(jnp.int32, scalars_ref.shape, 1)
    scalars_ref[...] = jnp.where(lane == 0, total,
                        jnp.where(lane == 1, mle,
                         jnp.where(lane == 2, g_dis, 0.0)))


# ---------------------------------------------------------------------------
# wrapper: label plumbing (glue) + pallas_call
# ---------------------------------------------------------------------------
def palm_forward(features, targets, protos, proto_class_counts, *,
                 num_classes=2, nviews=1, proto_m=0.99, temp=0.1,
                 lambda_pcon=1.0, k=5, epsilon=0.05, sinkhorn_iterations=3,
                 matmul_dtype=jnp.bfloat16):
    features = features.astype(jnp.float32)
    protos = protos.astype(jnp.float32)
    proto_class_counts = proto_class_counts.astype(jnp.float32)

    n, d = features.shape
    p = protos.shape[0]
    c = num_classes
    cache_size = p // num_classes
    k = min(k, cache_size)

    # anchor labels: targets repeated nviews times, as a lane-dense int32 row.
    # TODO(synk): the torch count update (update_mask.T @ one_hot(targets)) only
    # type-checks for nviews == 1; the tiled labels are used for both mask & one-hot.
    anchor_labels = jnp.tile(targets.astype(jnp.int32), nviews).reshape(1, n)

    kernel = functools.partial(
        _palm_kernel, k=k, num_classes=c,
        inv_temp=1.0 / temp, inv_eps=1.0 / epsilon,
        proto_m=proto_m, lambda_pcon=lambda_pcon,
        sinkhorn_iterations=sinkhorn_iterations, matmul_dtype=matmul_dtype)

    # Everything is small enough to be fully VMEM-resident: single invocation,
    # whole-array default blocks (no grid / BlockSpecs needed).
    # TODO(synk): for very large batches on v7x (64 MiB VMEM) tile over N with a
    # two-pass Sinkhorn and pipelined BlockSpecs instead of full residency.
    new_protos, new_counts, scalars = pl.pallas_call(
        kernel,
        out_shape=[
            jax.ShapeDtypeStruct((p, d), jnp.float32),      # updated prototypes
            jax.ShapeDtypeStruct((p, c), jnp.float32),      # updated class counts
            jax.ShapeDtypeStruct((1, 128), jnp.float32),    # packed loss scalars
        ],
        input_output_aliases={2: 0, 3: 1},                  # in-place EMA update
    )(anchor_labels, features, protos, proto_class_counts)

    # Return device scalars; the caller decides when (if ever) to sync to host.
    loss = scalars[0, 0]
    loss_dict = {"mle": scalars[0, 1], "proto_contra": scalars[0, 2]}
    return loss, loss_dict, new_protos, new_counts


if __name__ == "__main__":
    # small synthetic shapes consistent with the module:
    #   batch N = 8 (nviews=1), feat_dim D = 32, num_classes = 2, n_protos = 8
    num_classes = 2
    n_protos = 8
    feat_dim = 32
    batch = 8
    nviews = 1

    key = jax.random.PRNGKey(0)
    kf, kt, kp = jax.random.split(key, 3)

    features = jax.random.normal(kf, (batch * nviews, feat_dim), dtype=jnp.float32)
    features = features / jnp.linalg.norm(features, axis=1, keepdims=True)
    targets = jax.random.randint(kt, (batch,), 0, num_classes, dtype=jnp.int32)

    # deterministic "buffer" init, mirroring torch.rand + F.normalize in __init__
    protos = jax.random.uniform(kp, (n_protos, feat_dim), dtype=jnp.float32)
    protos = protos / jnp.linalg.norm(protos, axis=1, keepdims=True)
    proto_class_counts = jnp.zeros((n_protos, num_classes), dtype=jnp.float32)

    loss, loss_dict, new_protos, new_counts = palm_forward(
        features, targets, protos, proto_class_counts,
        num_classes=num_classes, nviews=nviews, proto_m=0.99, temp=0.1,
        lambda_pcon=1.0, k=5, epsilon=0.05)

    jax.block_until_ready((loss, loss_dict, new_protos, new_counts))
    print("KERNEL_OK")
</pallas_src>

<mosaic_0001>
module attributes {stable_mosaic.version = 11 : i64} {
  func.func @_palm_kernel(%arg0: memref<1x8xi32, #tpu.memory_space<vmem>>, %arg1: memref<8x32xf32, #tpu.memory_space<vmem>>, %arg2: memref<8x32xf32, #tpu.memory_space<vmem>>, %arg3: memref<8x2xf32, #tpu.memory_space<vmem>>, %arg4: memref<8x32xf32, #tpu.memory_space<vmem>>, %arg5: memref<8x2xf32, #tpu.memory_space<vmem>>, %arg6: memref<1x128xf32, #tpu.memory_space<vmem>>) attributes {dimension_semantics = [], scalar_prefetch = 0 : i64, scratch_operands = 0 : i64, tpu.core_type = #tpu.core_type<tc>} {
    %c0 = arith.constant 0 : index
    %c0_0 = arith.constant 0 : index
    %0 = vector.load %arg0[%c0, %c0_0] : memref<1x8xi32, #tpu.memory_space<vmem>>, vector<1x8xi32>
    %c0_1 = arith.constant 0 : index
    %c0_2 = arith.constant 0 : index
    %1 = vector.load %arg1[%c0_1, %c0_2] : memref<8x32xf32, #tpu.memory_space<vmem>>, vector<8x32xf32>
    %c0_3 = arith.constant 0 : index
    %c0_4 = arith.constant 0 : index
    %2 = vector.load %arg2[%c0_3, %c0_4] : memref<8x32xf32, #tpu.memory_space<vmem>>, vector<8x32xf32>
    %c0_5 = arith.constant 0 : index
    %c0_6 = arith.constant 0 : index
    %3 = vector.load %arg3[%c0_5, %c0_6] : memref<8x2xf32, #tpu.memory_space<vmem>>, vector<8x2xf32>
    %4 = arith.truncf %1 : vector<8x32xf32> to vector<8x32xbf16>
    %5 = tpu.iota {dimensions = array<i32: 0>} : vector<8x1xi32>
    %6 = tpu.iota {dimensions = array<i32: 1>} : vector<1x8xi32>
    %c2_i32 = arith.constant 2 : i32
    %c0_i32 = arith.constant 0 : i32
    %7 = arith.cmpi eq, %c2_i32, %c0_i32 : i32
    %c1_i32 = arith.constant 1 : i32
    %8 = arith.select %7, %c1_i32, %c2_i32 : i32
    %9 = vector.broadcast %8 : i32 to vector<8x1xi32>
    %10 = arith.remsi %5, %9 : vector<8x1xi32>
    %c0_i32_7 = arith.constant 0 : i32
    %11 = vector.broadcast %c0_i32_7 : i32 to vector<8x1xi32>
    %12 = arith.cmpi ne, %10, %11 : vector<8x1xi32>
    %c0_i32_8 = arith.constant 0 : i32
    %13 = vector.broadcast %c0_i32_8 : i32 to vector<8x1xi32>
    %14 = arith.cmpi slt, %10, %13 : vector<8x1xi32>
    %c0_i32_9 = arith.constant 0 : i32
    %15 = arith.cmpi slt, %8, %c0_i32_9 : i32
    %16 = vector.broadcast %15 : i1 to vector<8x1xi1>
    %17 = vector.broadcast %16 : vector<8x1xi1> to vector<8x1xi1>
    %18 = arith.xori %14, %17 : vector<8x1xi1>
    %19 = arith.andi %18, %12 : vector<8x1xi1>
    %20 = vector.broadcast %8 : i32 to vector<8x1xi32>
    %21 = arith.addi %10, %20 : vector<8x1xi32>
    %22 = arith.select %19, %21, %10 : vector<8x1xi1>, vector<8x1xi32>
    %23 = vector.broadcast %22 : vector<8x1xi32> to vector<8x8xi32>
    %24 = vector.broadcast %0 : vector<1x8xi32> to vector<8x8xi32>
    %25 = arith.cmpi eq, %23, %24 : vector<8x8xi32>
    %cst = arith.constant 1.000000e+00 : f32
    %cst_10 = arith.constant 0.000000e+00 : f32
    %26 = vector.broadcast %cst : f32 to vector<8x8xf32>
    %27 = vector.broadcast %cst_10 : f32 to vector<8x8xf32>
    %28 = arith.select %25, %26, %27 : vector<8x8xi1>, vector<8x8xf32>
    %29 = tpu.iota {dimensions = array<i32: 0>} : vector<2x1xi32>
    %30 = vector.broadcast %29 : vector<2x1xi32> to vector<2x8xi32>
    %31 = vector.broadcast %0 : vector<1x8xi32> to vector<2x8xi32>
    %32 = arith.cmpi eq, %30, %31 : vector<2x8xi32>
    %cst_11 = arith.constant 1.000000e+00 : f32
    %cst_12 = arith.constant 0.000000e+00 : f32
    %33 = vector.broadcast %cst_11 : f32 to vector<2x8xf32>
    %34 = vector.broadcast %cst_12 : f32 to vector<2x8xf32>
    %35 = arith.select %32, %33, %34 : vector<2x8xi1>, vector<2x8xf32>
    %c2_i32_13 = arith.constant 2 : i32
    %c0_i32_14 = arith.constant 0 : i32
    %36 = arith.cmpi eq, %c2_i32_13, %c0_i32_14 : i32
    %c1_i32_15 = arith.constant 1 : i32
    %37 = arith.select %36, %c1_i32_15, %c2_i32_13 : i32
    %38 = vector.broadcast %37 : i32 to vector<1x8xi32>
    %39 = arith.remsi %6, %38 : vector<1x8xi32>
    %c0_i32_16 = arith.constant 0 : i32
    %40 = vector.broadcast %c0_i32_16 : i32 to vector<1x8xi32>
    %41 = arith.cmpi ne, %39, %40 : vector<1x8xi32>
    %c0_i32_17 = arith.constant 0 : i32
    %42 = vector.broadcast %c0_i32_17 : i32 to vector<1x8xi32>
    %43 = arith.cmpi slt, %39, %42 : vector<1x8xi32>
    %c0_i32_18 = arith.constant 0 : i32
    %44 = arith.cmpi slt, %37, %c0_i32_18 : i32
    %45 = vector.broadcast %44 : i1 to vector<1x8xi1>
    %46 = vector.broadcast %45 : vector<1x8xi1> to vector<1x8xi1>
    %47 = arith.xori %43, %46 : vector<1x8xi1>
    %48 = arith.andi %47, %41 : vector<1x8xi1>
    %49 = vector.broadcast %37 : i32 to vector<1x8xi32>
    %50 = arith.addi %39, %49 : vector<1x8xi32>
    %51 = arith.select %48, %50, %39 : vector<1x8xi1>, vector<1x8xi32>
    %52 = vector.broadcast %22 : vector<8x1xi32> to vector<8x8xi32>
    %53 = vector.broadcast %51 : vector<1x8xi32> to vector<8x8xi32>
    %54 = arith.cmpi eq, %52, %53 : vector<8x8xi32>
    %cst_19 = arith.constant 1.000000e+00 : f32
    %cst_20 = arith.constant 0.000000e+00 : f32
    %55 = vector.broadcast %cst_19 : f32 to vector<8x8xf32>
    %56 = vector.broadcast %cst_20 : f32 to vector<8x8xf32>
    %57 = arith.select %54, %55, %56 : vector<8x8xi1>, vector<8x8xf32>
    %58 = vector.broadcast %5 : vector<8x1xi32> to vector<8x8xi32>
    %59 = vector.broadcast %6 : vector<1x8xi32> to vector<8x8xi32>
    %60 = arith.cmpi ne, %58, %59 : vector<8x8xi32>
    %cst_21 = arith.constant 1.000000e+00 : f32
    %cst_22 = arith.constant 0.000000e+00 : f32
    %61 = vector.broadcast %cst_21 : f32 to vector<8x8xf32>
    %62 = vector.broadcast %cst_22 : f32 to vector<8x8xf32>
    %63 = arith.select %60, %61, %62 : vector<8x8xi1>, vector<8x8xf32>
    %64 = arith.truncf %2 : vector<8x32xf32> to vector<8x32xbf16>
    %cst_23 = arith.constant dense<0.000000e+00> : vector<8x8xf32>
    %65 = tpu.matmul %64, %4, %cst_23 {dimension_numbers = #tpu.dot_dimension_numbers<[1], [1], [0], [0], [0, 0, 1, 0], [], []>} : vector<8x32xbf16>, vector<8x32xbf16>, vector<8x8xf32> -> vector<8x8xf32>
    %cst_24 = arith.constant 2.000000e+01 : f32
    %66 = vector.broadcast %cst_24 : f32 to vector<8x8xf32>
    %67 = arith.mulf %65, %66 : vector<8x8xf32>
    %68 = vector.shape_cast %67 : vector<8x8xf32> to vector<1x8x8xf32>
    %cst_25 = arith.constant dense<0xFF800000> : vector<1xf32>
    %69 = vector.multi_reduction <maximumf>, %68, %cst_25 [1, 2] : vector<1x8x8xf32> to vector<1xf32>
    %70 = vector.shape_cast %69 : vector<1xf32> to vector<1x1x1xf32>
    %71 = vector.extract %70[0, 0, 0] : f32 from vector<1x1x1xf32>
    %72 = vector.broadcast %71 : f32 to vector<1x1xf32>
    %73 = vector.broadcast %72 : vector<1x1xf32> to vector<8x8xf32>
    %74 = arith.subf %67, %73 : vector<8x8xf32>
    %75 = math.exp %74 : vector<8x8xf32>
    %76 = vector.shape_cast %75 : vector<8x8xf32> to vector<1x8x8xf32>
    %cst_26 = arith.constant dense<0.000000e+00> : vector<1xf32>
    %77 = vector.multi_reduction <add>, %76, %cst_26 [1, 2] : vector<1x8x8xf32> to vector<1xf32>
    %78 = vector.shape_cast %77 : vector<1xf32> to vector<1x1x1xf32>
    %79 = vector.extract %78[0, 0, 0] : f32 from vector<1x1x1xf32>
    %80 = vector.broadcast %79 : f32 to vector<1x1xf32>
    %81 = tpu.reciprocal %80 {approx = true} : vector<1x1xf32> -> vector<1x1xf32>
    %82 = vector.broadcast %81 : vector<1x1xf32> to vector<8x8xf32>
    %83 = arith.mulf %75, %82 : vector<8x8xf32>
    %84 = math.absf %83 : vector<8x8xf32>
    %cst_27 = arith.constant dense<0.000000e+00> : vector<8xf32>
    %85 = vector.multi_reduction <add>, %84, %cst_27 [1] : vector<8x8xf32> to vector<8xf32>
    %86 = vector.shape_cast %85 : vector<8xf32> to vector<8x1xf32>
    %cst_28 = arith.constant 9.99999996E-13 : f32
    %87 = vector.broadcast %cst_28 : f32 to vector<8x1xf32>
    %88 = arith.maximumf %86, %87 : vector<8x1xf32>
    %89 = tpu.reciprocal %88 {approx = true} : vector<8x1xf32> -> vector<8x1xf32>
    %90 = vector.broadcast %89 : vector<8x1xf32> to vector<8x8xf32>
    %91 = arith.mulf %83, %90 : vector<8x8xf32>
    %cst_29 = arith.constant 1.250000e-01 : f32
    %92 = vector.broadcast %cst_29 : f32 to vector<8x8xf32>
    %93 = arith.mulf %91, %92 : vector<8x8xf32>
    %94 = math.absf %93 : vector<8x8xf32>
    %cst_30 = arith.constant dense<0.000000e+00> : vector<8xf32>
    %95 = vector.multi_reduction <add>, %94, %cst_30 [0] : vector<8x8xf32> to vector<8xf32>
    %96 = vector.shape_cast %95 : vector<8xf32> to vector<1x8xf32>
    %cst_31 = arith.constant 9.99999996E-13 : f32
    %97 = vector.broadcast %cst_31 : f32 to vector<1x8xf32>
    %98 = arith.maximumf %96, %97 : vector<1x8xf32>
    %99 = tpu.reciprocal %98 {approx = true} : vector<1x8xf32> -> vector<1x8xf32>
    %100 = vector.broadcast %99 : vector<1x8xf32> to vector<8x8xf32>
    %101 = arith.mulf %93, %100 : vector<8x8xf32>
    %cst_32 = arith.constant 1.250000e-01 : f32
    %102 = vector.broadcast %cst_32 : f32 to vector<8x8xf32>
    %103 = arith.mulf %101, %102 : vector<8x8xf32>
    %104 = math.absf %103 : vector<8x8xf32>
    %cst_33 = arith.constant dense<0.000000e+00> : vector<8xf32>
    %105 = vector.multi_reduction <add>, %104, %cst_33 [1] : vector<8x8xf32> to vector<8xf32>
    %106 = vector.shape_cast %105 : vector<8xf32> to vector<8x1xf32>
    %cst_34 = arith.constant 9.99999996E-13 : f32
    %107 = vector.broadcast %cst_34 : f32 to vector<8x1xf32>
    %108 = arith.maximumf %106, %107 : vector<8x1xf32>
    %109 = tpu.reciprocal %108 {approx = true} : vector<8x1xf32> -> vector<8x1xf32>
    %110 = vector.broadcast %109 : vector<8x1xf32> to vector<8x8xf32>
    %111 = arith.mulf %103, %110 : vector<8x8xf32>
    %cst_35 = arith.constant 1.250000e-01 : f32
    %112 = vector.broadcast %cst_35 : f32 to vector<8x8xf32>
    %113 = arith.mulf %111, %112 : vector<8x8xf32>
    %114 = math.absf %113 : vector<8x8xf32>
    %cst_36 = arith.constant dense<0.000000e+00> : vector<8xf32>
    %115 = vector.multi_reduction <add>, %114, %cst_36 [0] : vector<8x8xf32> to vector<8xf32>
    %116 = vector.shape_cast %115 : vector<8xf32> to vector<1x8xf32>
    %cst_37 = arith.constant 9.99999996E-13 : f32
    %117 = vector.broadcast %cst_37 : f32 to vector<1x8xf32>
    %118 = arith.maximumf %116, %117 : vector<1x8xf32>
    %119 = tpu.reciprocal %118 {approx = true} : vector<1x8xf32> -> vector<1x8xf32>
    %120 = vector.broadcast %119 : vector<1x8xf32> to vector<8x8xf32>
    %121 = arith.mulf %113, %120 : vector<8x8xf32>
    %cst_38 = arith.constant 1.250000e-01 : f32
    %122 = vector.broadcast %cst_38 : f32 to vector<8x8xf32>
    %123 = arith.mulf %121, %122 : vector<8x8xf32>
    %124 = math.absf %123 : vector<8x8xf32>
    %cst_39 = arith.constant dense<0.000000e+00> : vector<8xf32>
    %125 = vector.multi_reduction <add>, %124, %cst_39 [1] : vector<8x8xf32> to vector<8xf32>
    %126 = vector.shape_cast %125 : vector<8xf32> to vector<8x1xf32>
    %cst_40 = arith.constant 9.99999996E-13 : f32
    %127 = vector.broadcast %cst_40 : f32 to vector<8x1xf32>
    %128 = arith.maximumf %126, %127 : vector<8x1xf32>
    %129 = tpu.reciprocal %128 {approx = true} : vector<8x1xf32> -> vector<8x1xf32>
    %130 = vector.broadcast %129 : vector<8x1xf32> to vector<8x8xf32>
    %131 = arith.mulf %123, %130 : vector<8x8xf32>
    %cst_41 = arith.constant 1.250000e-01 : f32
    %132 = vector.broadcast %cst_41 : f32 to vector<8x8xf32>
    %133 = arith.mulf %131, %132 : vector<8x8xf32>
    %134 = math.absf %133 : vector<8x8xf32>
    %cst_42 = arith.constant dense<0.000000e+00> : vector<8xf32>
    %135 = vector.multi_reduction <add>, %134, %cst_42 [0] : vector<8x8xf32> to vector<8xf32>
    %136 = vector.shape_cast %135 : vector<8xf32> to vector<1x8xf32>
    %cst_43 = arith.constant 9.99999996E-13 : f32
    %137 = vector.broadcast %cst_43 : f32 to vector<1x8xf32>
    %138 = arith.maximumf %136, %137 : vector<1x8xf32>
    %139 = tpu.reciprocal %138 {approx = true} : vector<1x8xf32> -> vector<1x8xf32>
    %140 = vector.broadcast %139 : vector<1x8xf32> to vector<8x8xf32>
    %141 = arith.mulf %133, %140 : vector<8x8xf32>
    %cst_44 = arith.constant 1.250000e-01 : f32
    %142 = vector.broadcast %cst_44 : f32 to vector<8x8xf32>
    %143 = arith.mulf %141, %142 : vector<8x8xf32>
    %cst_45 = arith.constant 8.000000e+00 : f32
    %144 = vector.broadcast %cst_45 : f32 to vector<8x8xf32>
    %145 = arith.mulf %143, %144 : vector<8x8xf32>
    %146 = arith.mulf %28, %145 : vector<8x8xf32>
    %147 = tpu.iota {dimensions = array<i32: 0>} : vector<8x8xi32>
    %cst_46 = arith.constant 0.000000e+00 : f32
    %148 = vector.broadcast %cst_46 : f32 to vector<8x8xf32>
    %cst_47 = arith.constant dense<0xFF800000> : vector<8xf32>
    %149 = vector.multi_reduction <maximumf>, %146, %cst_47 [0] : vector<8x8xf32> to vector<8xf32>
    %150 = vector.shape_cast %149 : vector<8xf32> to vector<1x8xf32>
    %151 = vector.broadcast %150 : vector<1x8xf32> to vector<8x8xf32>
    %152 = arith.cmpf oeq, %146, %151 : vector<8x8xf32>
    %c8_i32 = arith.constant 8 : i32
    %153 = vector.broadcast %c8_i32 : i32 to vector<8x8xi32>
    %154 = arith.select %152, %147, %153 : vector<8x8xi1>, vector<8x8xi32>
    %cst_48 = arith.constant dense<2147483647> : vector<8xi32>
    %155 = vector.multi_reduction <minsi>, %154, %cst_48 [0] : vector<8x8xi32> to vector<8xi32>
    %156 = vector.shape_cast %155 : vector<8xi32> to vector<1x8xi32>
    %157 = vector.broadcast %156 : vector<1x8xi32> to vector<8x8xi32>
    %158 = arith.cmpi eq, %147, %157 : vector<8x8xi32>
    %cst_49 = arith.constant 1.000000e+00 : f32
    %159 = vector.broadcast %cst_49 : f32 to vector<8x8xf32>
    %160 = arith.select %158, %159, %148 : vector<8x8xi1>, vector<8x8xf32>
    %cst_50 = arith.constant -1.000000e+30 : f32
    %161 = vector.broadcast %cst_50 : f32 to vector<8x8xf32>
    %162 = arith.select %158, %161, %146 : vector<8x8xi1>, vector<8x8xf32>
    %cst_51 = arith.constant dense<0xFF800000> : vector<8xf32>
    %163 = vector.multi_reduction <maximumf>, %162, %cst_51 [0] : vector<8x8xf32> to vector<8xf32>
    %164 = vector.shape_cast %163 : vector<8xf32> to vector<1x8xf32>
    %165 = vector.broadcast %164 : vector<1x8xf32> to vector<8x8xf32>
    %166 = arith.cmpf oeq, %162, %165 : vector<8x8xf32>
    %c8_i32_52 = arith.constant 8 : i32
    %167 = vector.broadcast %c8_i32_52 : i32 to vector<8x8xi32>
    %168 = arith.select %166, %147, %167 : vector<8x8xi1>, vector<8x8xi32>
    %cst_53 = arith.constant dense<2147483647> : vector<8xi32>
    %169 = vector.multi_reduction <minsi>, %168, %cst_53 [0] : vector<8x8xi32> to vector<8xi32>
    %170 = vector.shape_cast %169 : vector<8xi32> to vector<1x8xi32>
    %171 = vector.broadcast %170 : vector<1x8xi32> to vector<8x8xi32>
    %172 = arith.cmpi eq, %147, %171 : vector<8x8xi32>
    %cst_54 = arith.constant 1.000000e+00 : f32
    %173 = vector.broadcast %cst_54 : f32 to vector<8x8xf32>
    %174 = arith.select %172, %173, %160 : vector<8x8xi1>, vector<8x8xf32>
    %cst_55 = arith.constant -1.000000e+30 : f32
    %175 = vector.broadcast %cst_55 : f32 to vector<8x8xf32>
    %176 = arith.select %172, %175, %162 : vector<8x8xi1>, vector<8x8xf32>
    %cst_56 = arith.constant dense<0xFF800000> : vector<8xf32>
    %177 = vector.multi_reduction <maximumf>, %176, %cst_56 [0] : vector<8x8xf32> to vector<8xf32>
    %178 = vector.shape_cast %177 : vector<8xf32> to vector<1x8xf32>
    %179 = vector.broadcast %178 : vector<1x8xf32> to vector<8x8xf32>
    %180 = arith.cmpf oeq, %176, %179 : vector<8x8xf32>
    %c8_i32_57 = arith.constant 8 : i32
    %181 = vector.broadcast %c8_i32_57 : i32 to vector<8x8xi32>
    %182 = arith.select %180, %147, %181 : vector<8x8xi1>, vector<8x8xi32>
    %cst_58 = arith.constant dense<2147483647> : vector<8xi32>
    %183 = vector.multi_reduction <minsi>, %182, %cst_58 [0] : vector<8x8xi32> to vector<8xi32>
    %184 = vector.shape_cast %183 : vector<8xi32> to vector<1x8xi32>
    %185 = vector.broadcast %184 : vector<1x8xi32> to vector<8x8xi32>
    %186 = arith.cmpi eq, %147, %185 : vector<8x8xi32>
    %cst_59 = arith.constant 1.000000e+00 : f32
    %187 = vector.broadcast %cst_59 : f32 to vector<8x8xf32>
    %188 = arith.select %186, %187, %174 : vector<8x8xi1>, vector<8x8xf32>
    %cst_60 = arith.constant -1.000000e+30 : f32
    %189 = vector.broadcast %cst_60 : f32 to vector<8x8xf32>
    %190 = arith.select %186, %189, %176 : vector<8x8xi1>, vector<8x8xf32>
    %cst_61 = arith.constant dense<0xFF800000> : vector<8xf32>
    %191 = vector.multi_reduction <maximumf>, %190, %cst_61 [0] : vector<8x8xf32> to vector<8xf32>
    %192 = vector.shape_cast %191 : vector<8xf32> to vector<1x8xf32>
    %193 = vector.broadcast %192 : vector<1x8xf32> to vector<8x8xf32>
    %194 = arith.cmpf oeq, %190, %193 : vector<8x8xf32>
    %c8_i32_62 = arith.constant 8 : i32
    %195 = vector.broadcast %c8_i32_62 : i32 to vector<8x8xi32>
    %196 = arith.select %194, %147, %195 : vector<8x8xi1>, vector<8x8xi32>
    %cst_63 = arith.constant dense<2147483647> : vector<8xi32>
    %197 = vector.multi_reduction <minsi>, %196, %cst_63 [0] : vector<8x8xi32> to vector<8xi32>
    %198 = vector.shape_cast %197 : vector<8xi32> to vector<1x8xi32>
    %199 = vector.broadcast %198 : vector<1x8xi32> to vector<8x8xi32>
    %200 = arith.cmpi eq, %147, %199 : vector<8x8xi32>
    %cst_64 = arith.constant 1.000000e+00 : f32
    %201 = vector.broadcast %cst_64 : f32 to vector<8x8xf32>
    %202 = arith.select %200, %201, %188 : vector<8x8xi1>, vector<8x8xf32>
    %203 = arith.mulf %202, %146 : vector<8x8xf32>
    %204 = math.absf %203 : vector<8x8xf32>
    %cst_65 = arith.constant dense<0.000000e+00> : vector<8xf32>
    %205 = vector.multi_reduction <add>, %204, %cst_65 [0] : vector<8x8xf32> to vector<8xf32>
    %206 = vector.shape_cast %205 : vector<8xf32> to vector<1x8xf32>
    %cst_66 = arith.constant 9.99999996E-13 : f32
    %207 = vector.broadcast %cst_66 : f32 to vector<1x8xf32>
    %208 = arith.maximumf %206, %207 : vector<1x8xf32>
    %209 = tpu.reciprocal %208 {approx = true} : vector<1x8xf32> -> vector<1x8xf32>
    %210 = vector.broadcast %209 : vector<1x8xf32> to vector<8x8xf32>
    %211 = arith.mulf %203, %210 : vector<8x8xf32>
    %212 = math.absf %211 : vector<8x8xf32>
    %cst_67 = arith.constant dense<0.000000e+00> : vector<8xf32>
    %213 = vector.multi_reduction <add>, %212, %cst_67 [1] : vector<8x8xf32> to vector<8xf32>
    %214 = vector.shape_cast %213 : vector<8xf32> to vector<8x1xf32>
    %cst_68 = arith.constant 9.99999996E-13 : f32
    %215 = vector.broadcast %cst_68 : f32 to vector<8x1xf32>
    %216 = arith.maximumf %214, %215 : vector<8x1xf32>
    %217 = tpu.reciprocal %216 {approx = true} : vector<8x1xf32> -> vector<8x1xf32>
    %218 = vector.broadcast %217 : vector<8x1xf32> to vector<8x8xf32>
    %219 = arith.mulf %211, %218 : vector<8x8xf32>
    %220 = arith.truncf %219 : vector<8x8xf32> to vector<8x8xbf16>
    %cst_69 = arith.constant dense<0.000000e+00> : vector<8x32xf32>
    %221 = tpu.matmul %220, %4, %cst_69 {dimension_numbers = #tpu.dot_dimension_numbers<[1], [0], [0], [1], [0, 0, 1, 1], [], []>} : vector<8x8xbf16>, vector<8x32xbf16>, vector<8x32xf32> -> vector<8x32xf32>
    %222 = arith.truncf %35 : vector<2x8xf32> to vector<2x8xbf16>
    %cst_70 = arith.constant dense<0.000000e+00> : vector<8x2xf32>
    %223 = tpu.matmul %220, %222, %cst_70 {dimension_numbers = #tpu.dot_dimension_numbers<[1], [1], [0], [0], [0, 0, 1, 0], [], []>} : vector<8x8xbf16>, vector<2x8xbf16>, vector<8x2xf32> -> vector<8x2xf32>
    %224 = arith.addf %3, %223 : vector<8x2xf32>
    %cst_71 = arith.constant 9.900000e-01 : f32
    %225 = vector.broadcast %cst_71 : f32 to vector<8x32xf32>
    %226 = arith.mulf %225, %2 : vector<8x32xf32>
    %cst_72 = arith.constant 0.00999999977 : f32
    %227 = vector.broadcast %cst_72 : f32 to vector<8x32xf32>
    %228 = arith.mulf %227, %221 : vector<8x32xf32>
    %229 = arith.addf %226, %228 : vector<8x32xf32>
    %230 = arith.mulf %229, %229 : vector<8x32xf32>
    %cst_73 = arith.constant dense<0.000000e+00> : vector<8xf32>
    %231 = vector.multi_reduction <add>, %230, %cst_73 [1] : vector<8x32xf32> to vector<8xf32>
    %232 = vector.shape_cast %231 : vector<8xf32> to vector<8x1xf32>
    %cst_74 = arith.constant 1.000000e-24 : f32
    %233 = vector.broadcast %cst_74 : f32 to vector<8x1xf32>
    %234 = arith.maximumf %232, %233 : vector<8x1xf32>
    %235 = math.rsqrt %234 : vector<8x1xf32>
    %236 = vector.broadcast %235 : vector<8x1xf32> to vector<8x32xf32>
    %237 = arith.mulf %229, %236 : vector<8x32xf32>
    %c0_75 = arith.constant 0 : index
    %c0_76 = arith.constant 0 : index
    %238 = vector.load %arg4[%c0_75, %c0_76] : memref<8x32xf32, #tpu.memory_space<vmem>>, vector<8x32xf32>
    tpu.vector_store %arg4[%c0_75, %c0_76], %237 {strides = array<i32>} : memref<8x32xf32, #tpu.memory_space<vmem>>, vector<8x32xf32>,
    %c0_77 = arith.constant 0 : index
    %c0_78 = arith.constant 0 : index
    %239 = vector.load %arg5[%c0_77, %c0_78] : memref<8x2xf32, #tpu.memory_space<vmem>>, vector<8x2xf32>
    tpu.vector_store %arg5[%c0_77, %c0_78], %224 {strides = array<i32>} : memref<8x2xf32, #tpu.memory_space<vmem>>, vector<8x2xf32>,
    %240 = arith.truncf %237 : vector<8x32xf32> to vector<8x32xbf16>
    %cst_79 = arith.constant dense<0.000000e+00> : vector<8x8xf32>
    %241 = tpu.matmul %240, %4, %cst_79 {dimension_numbers = #tpu.dot_dimension_numbers<[1], [1], [0], [0], [0, 0, 1, 0], [], []>} : vector<8x32xbf16>, vector<8x32xbf16>, vector<8x8xf32> -> vector<8x8xf32>
    %cst_80 = arith.constant 2.000000e+01 : f32
    %242 = vector.broadcast %cst_80 : f32 to vector<8x8xf32>
    %243 = arith.mulf %241, %242 : vector<8x8xf32>
    %244 = vector.shape_cast %243 : vector<8x8xf32> to vector<1x8x8xf32>
    %cst_81 = arith.constant dense<0xFF800000> : vector<1xf32>
    %245 = vector.multi_reduction <maximumf>, %244, %cst_81 [1, 2] : vector<1x8x8xf32> to vector<1xf32>
    %246 = vector.shape_cast %245 : vector<1xf32> to vector<1x1x1xf32>
    %247 = vector.extract %246[0, 0, 0] : f32 from vector<1x1x1xf32>
    %248 = vector.broadcast %247 : f32 to vector<1x1xf32>
    %249 = vector.broadcast %248 : vector<1x1xf32> to vector<8x8xf32>
    %250 = arith.subf %243, %249 : vector<8x8xf32>
    %251 = math.exp %250 : vector<8x8xf32>
    %252 = vector.shape_cast %251 : vector<8x8xf32> to vector<1x8x8xf32>
    %cst_82 = arith.constant dense<0.000000e+00> : vector<1xf32>
    %253 = vector.multi_reduction <add>, %252, %cst_82 [1, 2] : vector<1x8x8xf32> to vector<1xf32>
    %254 = vector.shape_cast %253 : vector<1xf32> to vector<1x1x1xf32>
    %255 = vector.extract %254[0, 0, 0] : f32 from vector<1x1x1xf32>
    %256 = vector.broadcast %255 : f32 to vector<1x1xf32>
    %257 = tpu.reciprocal %256 {approx = true} : vector<1x1xf32> -> vector<1x1xf32>
    %258 = vector.broadcast %257 : vector<1x1xf32> to vector<8x8xf32>
    %259 = arith.mulf %251, %258 : vector<8x8xf32>
    %260 = math.absf %259 : vector<8x8xf32>
    %cst_83 = arith.constant dense<0.000000e+00> : vector<8xf32>
    %261 = vector.multi_reduction <add>, %260, %cst_83 [1] : vector<8x8xf32> to vector<8xf32>
    %262 = vector.shape_cast %261 : vector<8xf32> to vector<8x1xf32>
    %cst_84 = arith.constant 9.99999996E-13 : f32
    %263 = vector.broadcast %cst_84 : f32 to vector<8x1xf32>
    %264 = arith.maximumf %262, %263 : vector<8x1xf32>
    %265 = tpu.reciprocal %264 {approx = true} : vector<8x1xf32> -> vector<8x1xf32>
    %266 = vector.broadcast %265 : vector<8x1xf32> to vector<8x8xf32>
    %267 = arith.mulf %259, %266 : vector<8x8xf32>
    %cst_85 = arith.constant 1.250000e-01 : f32
    %268 = vector.broadcast %cst_85 : f32 to vector<8x8xf32>
    %269 = arith.mulf %267, %268 : vector<8x8xf32>
    %270 = math.absf %269 : vector<8x8xf32>
    %cst_86 = arith.constant dense<0.000000e+00> : vector<8xf32>
    %271 = vector.multi_reduction <add>, %270, %cst_86 [0] : vector<8x8xf32> to vector<8xf32>
    %272 = vector.shape_cast %271 : vector<8xf32> to vector<1x8xf32>
    %cst_87 = arith.constant 9.99999996E-13 : f32
    %273 = vector.broadcast %cst_87 : f32 to vector<1x8xf32>
    %274 = arith.maximumf %272, %273 : vector<1x8xf32>
    %275 = tpu.reciprocal %274 {approx = true} : vector<1x8xf32> -> vector<1x8xf32>
    %276 = vector.broadcast %275 : vector<1x8xf32> to vector<8x8xf32>
    %277 = arith.mulf %269, %276 : vector<8x8xf32>
    %cst_88 = arith.constant 1.250000e-01 : f32
    %278 = vector.broadcast %cst_88 : f32 to vector<8x8xf32>
    %279 = arith.mulf %277, %278 : vector<8x8xf32>
    %280 = math.absf %279 : vector<8x8xf32>
    %cst_89 = arith.constant dense<0.000000e+00> : vector<8xf32>
    %281 = vector.multi_reduction <add>, %280, %cst_89 [1] : vector<8x8xf32> to vector<8xf32>
    %282 = vector.shape_cast %281 : vector<8xf32> to vector<8x1xf32>
    %cst_90 = arith.constant 9.99999996E-13 : f32
    %283 = vector.broadcast %cst_90 : f32 to vector<8x1xf32>
    %284 = arith.maximumf %282, %283 : vector<8x1xf32>
    %285 = tpu.reciprocal %284 {approx = true} : vector<8x1xf32> -> vector<8x1xf32>
    %286 = vector.broadcast %285 : vector<8x1xf32> to vector<8x8xf32>
    %287 = arith.mulf %279, %286 : vector<8x8xf32>
    %cst_91 = arith.constant 1.250000e-01 : f32
    %288 = vector.broadcast %cst_91 : f32 to vector<8x8xf32>
    %289 = arith.mulf %287, %288 : vector<8x8xf32>
    %290 = math.absf %289 : vector<8x8xf32>
    %cst_92 = arith.constant dense<0.000000e+00> : vector<8xf32>
    %291 = vector.multi_reduction <add>, %290, %cst_92 [0] : vector<8x8xf32> to vector<8xf32>
    %292 = vector.shape_cast %291 : vector<8xf32> to vector<1x8xf32>
    %cst_93 = arith.constant 9.99999996E-13 : f32
    %293 = vector.broadcast %cst_93 : f32 to vector<1x8xf32>
    %294 = arith.maximumf %292, %293 : vector<1x8xf32>
    %295 = tpu.reciprocal %294 {approx = true} : vector<1x8xf32> -> vector<1x8xf32>
    %296 = vector.broadcast %295 : vector<1x8xf32> to vector<8x8xf32>
    %297 = arith.mulf %289, %296 : vector<8x8xf32>
    %cst_94 = arith.constant 1.250000e-01 : f32
    %298 = vector.broadcast %cst_94 : f32 to vector<8x8xf32>
    %299 = arith.mulf %297, %298 : vector<8x8xf32>
    %300 = math.absf %299 : vector<8x8xf32>
    %cst_95 = arith.constant dense<0.000000e+00> : vector<8xf32>
    %301 = vector.multi_reduction <add>, %300, %cst_95 [1] : vector<8x8xf32> to vector<8xf32>
    %302 = vector.shape_cast %301 : vector<8xf32> to vector<8x1xf32>
    %cst_96 = arith.constant 9.99999996E-13 : f32
    %303 = vector.broadcast %cst_96 : f32 to vector<8x1xf32>
    %304 = arith.maximumf %302, %303 : vector<8x1xf32>
    %305 = tpu.reciprocal %304 {approx = true} : vector<8x1xf32> -> vector<8x1xf32>
    %306 = vector.broadcast %305 : vector<8x1xf32> to vector<8x8xf32>
    %307 = arith.mulf %299, %306 : vector<8x8xf32>
    %cst_97 = arith.constant 1.250000e-01 : f32
    %308 = vector.broadcast %cst_97 : f32 to vector<8x8xf32>
    %309 = arith.mulf %307, %308 : vector<8x8xf32>
    %310 = math.absf %309 : vector<8x8xf32>
    %cst_98 = arith.constant dense<0.000000e+00> : vector<8xf32>
    %311 = vector.multi_reduction <add>, %310, %cst_98 [0] : vector<8x8xf32> to vector<8xf32>
    %312 = vector.shape_cast %311 : vector<8xf32> to vector<1x8xf32>
    %cst_99 = arith.constant 9.99999996E-13 : f32
    %313 = vector.broadcast %cst_99 : f32 to vector<1x8xf32>
    %314 = arith.maximumf %312, %313 : vector<1x8xf32>
    %315 = tpu.reciprocal %314 {approx = true} : vector<1x8xf32> -> vector<1x8xf32>
    %316 = vector.broadcast %315 : vector<1x8xf32> to vector<8x8xf32>
    %317 = arith.mulf %309, %316 : vector<8x8xf32>
    %cst_100 = arith.constant 1.250000e-01 : f32
    %318 = vector.broadcast %cst_100 : f32 to vector<8x8xf32>
    %319 = arith.mulf %317, %318 : vector<8x8xf32>
    %cst_101 = arith.constant 8.000000e+00 : f32
    %320 = vector.broadcast %cst_101 : f32 to vector<8x8xf32>
    %321 = arith.mulf %319, %320 : vector<8x8xf32>
    %cst_102 = arith.constant 1.000000e+01 : f32
    %322 = vector.broadcast %cst_102 : f32 to vector<8x8xf32>
    %323 = arith.mulf %241, %322 : vector<8x8xf32>
    %324 = arith.mulf %28, %321 : vector<8x8xf32>
    %325 = arith.mulf %202, %324 : vector<8x8xf32>
    %326 = math.absf %325 : vector<8x8xf32>
    %cst_103 = arith.constant dense<0.000000e+00> : vector<8xf32>
    %327 = vector.multi_reduction <add>, %326, %cst_103 [0] : vector<8x8xf32> to vector<8xf32>
    %328 = vector.shape_cast %327 : vector<8xf32> to vector<1x8xf32>
    %cst_104 = arith.constant 9.99999996E-13 : f32
    %329 = vector.broadcast %cst_104 : f32 to vector<1x8xf32>
    %330 = arith.maximumf %328, %329 : vector<1x8xf32>
    %331 = tpu.reciprocal %330 {approx = true} : vector<1x8xf32> -> vector<1x8xf32>
    %332 = vector.broadcast %331 : vector<1x8xf32> to vector<8x8xf32>
    %333 = arith.mulf %325, %332 : vector<8x8xf32>
    %334 = arith.mulf %333, %323 : vector<8x8xf32>
    %cst_105 = arith.constant dense<0.000000e+00> : vector<8xf32>
    %335 = vector.multi_reduction <add>, %334, %cst_105 [0] : vector<8x8xf32> to vector<8xf32>
    %336 = vector.shape_cast %335 : vector<8xf32> to vector<1x8xf32>
    %cst_106 = arith.constant dense<0xFF800000> : vector<8xf32>
    %337 = vector.multi_reduction <maximumf>, %323, %cst_106 [0] : vector<8x8xf32> to vector<8xf32>
    %338 = vector.shape_cast %337 : vector<8xf32> to vector<1x8xf32>
    %339 = vector.broadcast %338 : vector<1x8xf32> to vector<8x8xf32>
    %340 = arith.subf %323, %339 : vector<8x8xf32>
    %341 = math.exp %340 : vector<8x8xf32>
    %cst_107 = arith.constant dense<0.000000e+00> : vector<8xf32>
    %342 = vector.multi_reduction <add>, %341, %cst_107 [0] : vector<8x8xf32> to vector<8xf32>
    %343 = vector.shape_cast %342 : vector<8xf32> to vector<1x8xf32>
    %344 = math.log %343 : vector<1x8xf32>
    %345 = arith.addf %338, %344 : vector<1x8xf32>
    %346 = vector.shape_cast %336 : vector<1x8xf32> to vector<1x1x8xf32>
    %cst_108 = arith.constant dense<0.000000e+00> : vector<1xf32>
    %347 = vector.multi_reduction <add>, %346, %cst_108 [1, 2] : vector<1x1x8xf32> to vector<1xf32>
    %348 = vector.shape_cast %347 : vector<1xf32> to vector<1x1x1xf32>
    %349 = vector.extract %348[0, 0, 0] : f32 from vector<1x1x1xf32>
    %350 = vector.broadcast %349 : f32 to vector<1x1xf32>
    %cst_109 = arith.constant 8.000000e+00 : f32
    %351 = vector.broadcast %cst_109 : f32 to vector<1x1xf32>
    %352 = arith.divf %350, %351 : vector<1x1xf32>
    %353 = vector.shape_cast %345 : vector<1x8xf32> to vector<1x1x8xf32>
    %cst_110 = arith.constant dense<0.000000e+00> : vector<1xf32>
    %354 = vector.multi_reduction <add>, %353, %cst_110 [1, 2] : vector<1x1x8xf32> to vector<1xf32>
    %355 = vector.shape_cast %354 : vector<1xf32> to vector<1x1x1xf32>
    %356 = vector.extract %355[0, 0, 0] : f32 from vector<1x1x1xf32>
    %357 = vector.broadcast %356 : f32 to vector<1x1xf32>
    %cst_111 = arith.constant 8.000000e+00 : f32
    %358 = vector.broadcast %cst_111 : f32 to vector<1x1xf32>
    %359 = arith.divf %357, %358 : vector<1x1xf32>
    %360 = arith.subf %352, %359 : vector<1x1xf32>
    %cst_112 = arith.constant 0.000000e+00 : f32
    %361 = vector.broadcast %cst_112 : f32 to vector<1x1xf32>
    %362 = arith.subf %361, %360 : vector<1x1xf32>
    %cst_113 = arith.constant dense<0.000000e+00> : vector<8x8xf32>
    %363 = tpu.matmul %240, %240, %cst_113 {dimension_numbers = #tpu.dot_dimension_numbers<[1], [1], [0], [0], [0, 0, 1, 0], [], []>} : vector<8x32xbf16>, vector<8x32xbf16>, vector<8x8xf32> -> vector<8x8xf32>
    %cst_114 = arith.constant 2.000000e+00 : f32
    %364 = vector.broadcast %cst_114 : f32 to vector<8x8xf32>
    %365 = arith.mulf %363, %364 : vector<8x8xf32>
    %cst_115 = arith.constant dense<0xFF800000> : vector<8xf32>
    %366 = vector.multi_reduction <maximumf>, %365, %cst_115 [1] : vector<8x8xf32> to vector<8xf32>
    %367 = vector.shape_cast %366 : vector<8xf32> to vector<8x1xf32>
    %368 = vector.broadcast %367 : vector<8x1xf32> to vector<8x8xf32>
    %369 = arith.subf %365, %368 : vector<8x8xf32>
    %370 = arith.mulf %57, %63 : vector<8x8xf32>
    %371 = math.absf %370 : vector<8x8xf32>
    %cst_116 = arith.constant dense<0.000000e+00> : vector<8xf32>
    %372 = vector.multi_reduction <add>, %371, %cst_116 [1] : vector<8x8xf32> to vector<8xf32>
    %373 = vector.shape_cast %372 : vector<8xf32> to vector<8x1xf32>
    %cst_117 = arith.constant 9.99999996E-13 : f32
    %374 = vector.broadcast %cst_117 : f32 to vector<8x1xf32>
    %375 = arith.maximumf %373, %374 : vector<8x1xf32>
    %376 = tpu.reciprocal %375 {approx = true} : vector<8x1xf32> -> vector<8x1xf32>
    %377 = vector.broadcast %376 : vector<8x1xf32> to vector<8x8xf32>
    %378 = arith.mulf %370, %377 : vector<8x8xf32>
    %379 = arith.mulf %378, %369 : vector<8x8xf32>
    %cst_118 = arith.constant dense<0.000000e+00> : vector<8xf32>
    %380 = vector.multi_reduction <add>, %379, %cst_118 [1] : vector<8x8xf32> to vector<8xf32>
    %381 = vector.shape_cast %380 : vector<8xf32> to vector<8x1xf32>
    %382 = math.exp %369 : vector<8x8xf32>
    %383 = arith.mulf %63, %382 : vector<8x8xf32>
    %cst_119 = arith.constant dense<0.000000e+00> : vector<8xf32>
    %384 = vector.multi_reduction <add>, %383, %cst_119 [1] : vector<8x8xf32> to vector<8xf32>
    %385 = vector.shape_cast %384 : vector<8xf32> to vector<8x1xf32>
    %386 = math.log %385 : vector<8x1xf32>
    %387 = arith.subf %381, %386 : vector<8x1xf32>
    %388 = vector.shape_cast %387 : vector<8x1xf32> to vector<1x8x1xf32>
    %cst_120 = arith.constant dense<0.000000e+00> : vector<1xf32>
    %389 = vector.multi_reduction <add>, %388, %cst_120 [1, 2] : vector<1x8x1xf32> to vector<1xf32>
    %390 = vector.shape_cast %389 : vector<1xf32> to vector<1x1x1xf32>
    %391 = vector.extract %390[0, 0, 0] : f32 from vector<1x1x1xf32>
    %392 = vector.broadcast %391 : f32 to vector<1x1xf32>
    %cst_121 = arith.constant 8.000000e+00 : f32
    %393 = vector.broadcast %cst_121 : f32 to vector<1x1xf32>
    %394 = arith.divf %392, %393 : vector<1x1xf32>
    %cst_122 = arith.constant 0.000000e+00 : f32
    %395 = vector.broadcast %cst_122 : f32 to vector<1x1xf32>
    %396 = arith.subf %395, %394 : vector<1x1xf32>
    %cst_123 = arith.constant 1.000000e+00 : f32
    %397 = vector.broadcast %cst_123 : f32 to vector<1x1xf32>
    %398 = arith.mulf %397, %396 : vector<1x1xf32>
    %399 = arith.addf %362, %398 : vector<1x1xf32>
    %400 = tpu.iota {dimensions = array<i32: 1>} : vector<1x128xi32>
    %c0_i32_124 = arith.constant 0 : i32
    %401 = vector.broadcast %c0_i32_124 : i32 to vector<1x128xi32>
    %402 = arith.cmpi eq, %400, %401 : vector<1x128xi32>
    %c1_i32_125 = arith.constant 1 : i32
    %403 = vector.broadcast %c1_i32_125 : i32 to vector<1x128xi32>
    %404 = arith.cmpi eq, %400, %403 : vector<1x128xi32>
    %c2_i32_126 = arith.constant 2 : i32
    %405 = vector.broadcast %c2_i32_126 : i32 to vector<1x128xi32>
    %406 = arith.cmpi eq, %400, %405 : vector<1x128xi32>
    %cst_127 = arith.constant 0.000000e+00 : f32
    %407 = vector.shape_cast %398 : vector<1x1xf32> to vector<1x1xf32>
    %408 = vector.broadcast %407 : vector<1x1xf32> to vector<1x128xf32>
    %409 = vector.broadcast %cst_127 : f32 to vector<1x128xf32>
    %410 = arith.select %406, %408, %409 : vector<1x128xi1>, vector<1x128xf32>
    %411 = vector.shape_cast %362 : vector<1x1xf32> to vector<1x1xf32>
    %412 = vector.broadcast %411 : vector<1x1xf32> to vector<1x128xf32>
    %413 = arith.select %404, %412, %410 : vector<1x128xi1>, vector<1x128xf32>
    %414 = vector.shape_cast %399 : vector<1x1xf32> to vector<1x1xf32>
    %415 = vector.broadcast %414 : vector<1x1xf32> to vector<1x128xf32>
    %416 = arith.select %402, %415, %413 : vector<1x128xi1>, vector<1x128xf32>
    %c0_128 = arith.constant 0 : index
    %c0_129 = arith.constant 0 : index
    %417 = vector.load %arg6[%c0_128, %c0_129] : memref<1x128xf32, #tpu.memory_space<vmem>>, vector<1x128xf32>
    tpu.vector_store %arg6[%c0_128, %c0_129], %416 {strides = array<i32>} : memref<1x128xf32, #tpu.memory_space<vmem>>, vector<1x128xf32>,
    return
  }
}

</mosaic_0001>

<bundles_post_ra>
// kernel: tpu_custom_call.1
= control target key start
LH: loop header
LB: loop body
LE: loop exit
PB: predicated region body
PF: predicated region fallthrough
CT: control target
= control target key end

     0   :  { %vm68_vm0 = vcmask 261120   ;;  %v867_v1 = vmov 0.0   ;;  %vm868_vm1 = vmmov 0   ;;  %s1080_s0 = inlined_call_operand.vmem [shape: s32[1,8], index: 0, kind: input, shape index: {}]   ;;  %s1081_s1 = inlined_call_operand.vmem [shape: f32[8,32], index: 1, kind: input, shape index: {}]   ;;  %s1082_s2 = inlined_call_operand.vmem [shape: f32[8,32], index: 2, kind: input, shape index: {}, may-alias: {2,4}]   ;;  %s1083_s3 = inlined_call_operand.vmem [shape: f32[8,2], index: 3, kind: input, shape index: {}, may-alias: {3,5}]   ;;  %s1084_s4 = inlined_call_operand.vmem [shape: f32[8,32], index: 4, kind: output, shape index: {0}, may-alias: {2,4}]   ;;  %s1085_s5 = inlined_call_operand.vmem [shape: f32[8,2], index: 5, kind: output, shape index: {1}, may-alias: {3,5}]   ;;  %s1086_s6 = inlined_call_operand.hbm [shape: f32[1,128], index: 6, kind: output, shape index: {2}]  }
   0x1   :  { %v23_v0 = vld [vmem:[%s1081_s1] sm:$0xff]  ;;  %746 = vmatprep.subr.bf16.mxu0 %v867_v1  ;;  %748 = vmatprep.mubr.msk.bf16.mxu0 %vm868_vm1, %v867_v1 }
   0x2   :  { %v909_v2 = vpack.c.bf16 %v23_v0, %v23_v0 }
   0x3   :  { %12 = vsyncpa [#allocation3], 0  ;;  %752 = vmatprep.subr.bf16.mxu1 %v867_v1  ;;  %754 = vmatprep.mubr.msk.bf16.mxu1 %vm868_vm1, %v867_v1  ;;  %v921_v4 = vld [vmem:[%s1082_s2] sm:$0xff]  ;;  %vm116_vm2 = vcmask 64512   ;;  %s869_s10 = smov [#allocation2]  }
   0x4   :  { %v73_v3 = vsel %vm68_vm0, %v909_v2, 0  ;;  %v67_v5 = vpack.c.bf16 %v921_v4, %v921_v4  ;;  %s718_s11 = sshll.u32 %s869_s10, 4  ;;  %s719_s11 = int_to_ptr.vmem [resolvable:$true] %s718_s11 }
   0x5   :  { %747 = vmatpush3.bf16.xpose.msra.mxu0 %v73_v3  ;;  %s843_s12 = scalar_lea.vmem %s719_s11, 16  ;;  %s847_s13 = scalar_lea.vmem %s719_s11, 32 }
   0x6   :  { %764 = vmatprep.subr.bf16.mxu0 %v867_v1  ;;  %p844_p0 = scmp.ne.s32.totalorder %s719_s11, %s843_s12  ;;  %p848_p1 = scmp.lt.s32.totalorder %s719_s11, %s719_s11 }
   0x7   :  { %p849_p2 = scmp.lt.s32.totalorder %s847_s13, %s843_s12 }
   0x9   :  { %p850_p3 = por %p849_p2, %p848_p1 }
   0xb   :  { %p851_p4 = pnand %p850_p3, %p844_p0 }
   0xc   :  { %749 = vmatmul.mubr.msk.bf16.vlgmr.msra.gmra.mrb[0].mxu0 %vm68_vm0, %v67_v5 }
   0xd   :  { %765 = vmatpush3.bf16.xpose.msra.mxu0 %v73_v3  ;;  %766 = vmatprep.mubr.msk.bf16.mxu0 %vm868_vm1, %v867_v1 }
  0xdf   :  { %v109_v6 = vpop.f32.mrb[0].mxu0 }
  0xe0   :  { %v115_v7 = vmul.f32 20.0, %v109_v6  ;;  %v750_v8 = vpop.f32.mrb[1].mxu0 }
  0xe1   :  { %v112_v9 = vpop.f32.mrb[2].mxu0 }
  0xe2   :  { %v751_v10 = vpop.f32.mrb[3].mxu0  ;;  %v117_v11 = vsel %vm116_vm2, %v115_v7, -inf }
  0xe3   :  { %118 = vmax.xlane.f32.xlu0 %v117_v11 }
 0x170   :  { %v119_v12 = vpop.xlane.xlu0 %118 }
 0x171   :  { %v120_v13 = vrot.slane %v119_v12, 4 }
 0x173   :  { %v121_v14 = vmax.f32 %v119_v12, %v120_v13 }
 0x175   :  { %v122_v15 = vrot.slane %v121_v14, 2 }
 0x177   :  { %v123_v16 = vmax.f32 %v121_v14, %v122_v15 }
 0x179   :  { %v124_v17 = vrot.slane %v123_v16, 1 }
 0x17b   :  { %v125_v18 = vmax.f32 %v123_v16, %v124_v17 }
 0x17d   :  { %776 = vpush %v125_v18 }
 0x1ae   :  { %s777_s2 = spop %776 }
 0x1af   :  { %v127_v19 = vstv %s777_s2 }
 0x1b0   :  { %v128_v20 = vsub.f32 %v115_v7, %v127_v19 }
 0x1b2   :  { %v129_v21 = vmul.f32 1.442695, %v128_v20 }
 0x1b4   :  { %793 = vpow2.f32 %v129_v21 }
 0x1be   :  { %v794_v22 = vpop.eup %793 }
 0x1bf   :  { %v131_v23 = vsel %vm116_vm2, %v794_v22, 0.0 }
 0x1c0   :  { %132 = vadd.xlane.f32.xlu0 %v131_v23 }
 0x24d   :  { %v133_v24 = vpop.xlane.xlu0 %132 }
 0x24e   :  { %v134_v25 = vrot.slane %v133_v24, 4 }
 0x250   :  { %v135_v26 = vadd.f32 %v134_v25, %v133_v24 }
 0x252   :  { %v136_v27 = vrot.slane %v135_v26, 2 }
 0x254   :  { %v137_v28 = vadd.f32 %v136_v27, %v135_v26  ;;  %v27_v27 = vlaneseq }
 0x256   :  { %v138_v29 = vrot.slane %v137_v28, 1 }
 0x258   :  { %v139_v30 = vadd.f32 %v138_v29, %v137_v28  ;;  %v938_v28 = vshrl.u32 %v27_v27, 7 }
 0x25a   :  { %778 = vpush %v139_v30  ;;  %v35_v29 = vand.u32 1, %v938_v28  ;;  %v944_v30 = vld [vmem:[%s1080_s0] ss:$0 sm:$0xff] }
 0x25c   :  { %vm47_vm3 = vcmp.eq.s32.totalorder %v35_v29, %v944_v30 }
 0x28b   :  { %s779_s24 = spop %778 }
 0x28c   :  { %v141_v31 = vstv %s779_s24 }
 0x28d   :  { %795 = vrcp.f32 %v141_v31 }
 0x297   :  { %v796_v32 = vpop.eup %795 }
 0x298   :  { %v143_v33 = vmul.f32 %v796_v32, %v794_v22 }
 0x29a   :  { %v144_v34 = vand.u32 2147483647, %v143_v33 }
 0x29c   :  { %v145_v35 = vsel %vm116_vm2, %v144_v34, 0.0  ;;  %v950_v34 = vsel %vm47_vm3, 1.0, %v867_v1 }
 0x29d   :  { %146 = vadd.xlane.f32.xlu1 %v145_v35 }
 0x32a   :  { %v147_v36 = vpop.xlane.xlu1 %146 }
 0x32b   :  { %v148_v37 = vmax.f32 %v147_v36, 1e-12 }
 0x32d   :  { %797 = vrcp.f32 %v148_v37 }
 0x337   :  { %v798_v38 = vpop.eup %797 }
 0x338   :  { %v150_v39 = vmul.f32 %v798_v38, %v143_v33 }
 0x33a   :  { %v151_v40 = vmul.f32 0.125, %v150_v39 }
 0x33c   :  { %v152_v41 = vand.u32 2147483647, %v151_v40 }
 0x33e   :  { %v153_v42 = vsel %vm116_vm2, %v152_v41, 0.0 }
 0x33f   :  { %v154_v43 = vrot.slane %v153_v42, 4 }
 0x341   :  { %v155_v44 = vadd.f32 %v154_v43, %v153_v42 }
 0x343   :  { %v156_v45 = vrot.slane %v155_v44, 2 }
 0x345   :  { %v157_v46 = vadd.f32 %v156_v45, %v155_v44 }
 0x347   :  { %v158_v47 = vrot.slane %v157_v46, 1 }
 0x349   :  { %v159_v48 = vadd.f32 %v158_v47, %v157_v46 }
 0x34b   :  { %v160_v49 = vmax.f32 %v159_v48, 1e-12 }
 0x34d   :  { %799 = vrcp.f32 %v160_v49 }
 0x357   :  { %v800_v50 = vpop.eup %799 }
 0x358   :  { %v162_v51 = vmul.f32 %v800_v50, %v151_v40 }
 0x35a   :  { %v163_v52 = vmul.f32 0.125, %v162_v51 }
 0x35c   :  { %v164_v53 = vand.u32 2147483647, %v163_v52 }
 0x35e   :  { %v165_v54 = vsel %vm116_vm2, %v164_v53, 0.0 }
 0x35f   :  { %166 = vadd.xlane.f32.xlu1 %v165_v54 }
 0x3ec   :  { %v167_v55 = vpop.xlane.xlu1 %166 }
 0x3ed   :  { %v168_v56 = vmax.f32 %v167_v55, 1e-12 }
 0x3ef   :  { %801 = vrcp.f32 %v168_v56 }
 0x3f9   :  { %v802_v57 = vpop.eup %801 }
 0x3fa   :  { %v170_v58 = vmul.f32 %v802_v57, %v163_v52 }
 0x3fc   :  { %v171_v59 = vmul.f32 0.125, %v170_v58 }
 0x3fe   :  { %v172_v60 = vand.u32 2147483647, %v171_v59 }
 0x400   :  { %v173_v61 = vsel %vm116_vm2, %v172_v60, 0.0 }
 0x401   :  { %v174_v62 = vrot.slane %v173_v61, 4 }
 0x403   :  { %v175_v63 = vadd.f32 %v174_v62, %v173_v61 }
 0x405   :  { %v176_v0 = vrot.slane %v175_v63, 2 }
 0x407   :  { %v177_v3 = vadd.f32 %v176_v0, %v175_v63 }
 0x409   :  { %v178_v5 = vrot.slane %v177_v3, 1 }
 0x40b   :  { %v179_v6 = vadd.f32 %v178_v5, %v177_v3 }
 0x40d   :  { %v180_v7 = vmax.f32 %v179_v6, 1e-12 }
 0x40f   :  { %803 = vrcp.f32 %v180_v7 }
 0x419   :  { %v804_v8 = vpop.eup %803 }
 0x41a   :  { %v182_v9 = vmul.f32 %v804_v8, %v171_v59 }
 0x41c   :  { %v183_v10 = vmul.f32 0.125, %v182_v9 }
 0x41e   :  { %v184_v11 = vand.u32 2147483647, %v183_v10 }
 0x420   :  { %v185_v12 = vsel %vm116_vm2, %v184_v11, 0.0 }
 0x421   :  { %186 = vadd.xlane.f32.xlu0 %v185_v12 }
 0x4ae   :  { %v187_v13 = vpop.xlane.xlu0 %186 }
 0x4af   :  { %v188_v14 = vmax.f32 %v187_v13, 1e-12 }
 0x4b1   :  { %805 = vrcp.f32 %v188_v14 }
 0x4bb   :  { %v806_v15 = vpop.eup %805 }
 0x4bc   :  { %v190_v16 = vmul.f32 %v806_v15, %v183_v10 }
 0x4be   :  { %v191_v17 = vmul.f32 0.125, %v190_v16 }
 0x4c0   :  { %v192_v18 = vand.u32 2147483647, %v191_v17 }
 0x4c2   :  { %v193_v19 = vsel %vm116_vm2, %v192_v18, 0.0 }
 0x4c3   :  { %v194_v20 = vrot.slane %v193_v19, 4 }
 0x4c5   :  { %v195_v21 = vadd.f32 %v194_v20, %v193_v19 }
 0x4c7   :  { %v196_v22 = vrot.slane %v195_v21, 2 }
 0x4c9   :  { %v197_v23 = vadd.f32 %v196_v22, %v195_v21 }
 0x4cb   :  { %v198_v24 = vrot.slane %v197_v23, 1 }
 0x4cd   :  { %v199_v25 = vadd.f32 %v198_v24, %v197_v23 }
 0x4cf   :  { %v200_v26 = vmax.f32 %v199_v25, 1e-12 }
 0x4d1   :  { %807 = vrcp.f32 %v200_v26 }
 0x4db   :  { %v808_v31 = vpop.eup %807 }
 0x4dc   :  { %v202_v32 = vmul.f32 %v808_v31, %v191_v17 }
 0x4de   :  { %v203_v33 = vmul.f32 0.125, %v202_v32 }
 0x4e0   :  { %v204_v35 = vmul.f32 8.0, %v203_v33 }
 0x4e2   :  { %v953_v36 = vmul.f32 %v204_v35, %v950_v34 }
 0x4e4   :  { %v206_v37 = vsel %vm116_vm2, %v953_v36, -inf }
 0x4e5   :  { %v207_v38 = vrot.slane %v206_v37, 4 }
 0x4e7   :  { %v208_v39 = vmax.f32 %v206_v37, %v207_v38 }
 0x4e9   :  { %v209_v40 = vrot.slane %v208_v39, 2 }
 0x4eb   :  { %v210_v41 = vmax.f32 %v208_v39, %v209_v40 }
 0x4ed   :  { %v211_v42 = vrot.slane %v210_v41, 1 }
 0x4ef   :  { %v212_v43 = vmax.f32 %v210_v41, %v211_v42 }
 0x4f1   :  { %vm213_vm4 = vcmp.eq.f32.partialorder %v953_v36, %v212_v43 }
 0x4f2   :  { %v214_v44 = vsel %vm213_vm4, %v938_v28, 8 }
 0x4f3   :  { %v215_v45 = vsel %vm116_vm2, %v214_v44, 2147483647 }
 0x4f4   :  { %v216_v46 = vrot.slane %v215_v45, 4 }
 0x4f6   :  { %vm217_vm5 = vcmp.lt.s32.totalorder %v215_v45, %v216_v46 }
 0x4f7   :  { %v218_v47 = vsel %vm217_vm5, %v215_v45, %v216_v46 }
 0x4f8   :  { %v219_v48 = vrot.slane %v218_v47, 2 }
 0x4fa   :  { %vm220_vm6 = vcmp.lt.s32.totalorder %v218_v47, %v219_v48 }
 0x4fb   :  { %v221_v49 = vsel %vm220_vm6, %v218_v47, %v219_v48 }
 0x4fc   :  { %v222_v50 = vrot.slane %v221_v49, 1 }
 0x4fe   :  { %vm223_vm7 = vcmp.lt.s32.totalorder %v221_v49, %v222_v50 }
 0x4ff   :  { %v960_v51 = vsel %vm223_vm7, %v221_v49, %v222_v50 }
 0x500   :  { %vm225_vm8 = vcmp.eq.s32.totalorder %v938_v28, %v960_v51 }
 0x501   :  { %v227_v52 = vsel %vm225_vm8, -1e+30, %v953_v36  ;;  %v226_v44 = vsel %vm225_vm8, 1.0, %v867_v1  ;;  %vm316_vm8 = vcmask 1043456  }
 0x502   :  { %v228_v53 = vsel %vm116_vm2, %v227_v52, -inf }
 0x503   :  { %v229_v54 = vrot.slane %v228_v53, 4 }
 0x505   :  { %v230_v55 = vmax.f32 %v228_v53, %v229_v54 }
 0x507   :  { %v231_v56 = vrot.slane %v230_v55, 2 }
 0x509   :  { %v232_v57 = vmax.f32 %v230_v55, %v231_v56 }
 0x50b   :  { %v233_v58 = vrot.slane %v232_v57, 1 }
 0x50d   :  { %v234_v59 = vmax.f32 %v232_v57, %v233_v58 }
 0x50f   :  { %vm235_vm9 = vcmp.eq.f32.partialorder %v227_v52, %v234_v59 }
 0x510   :  { %v236_v60 = vsel %vm235_vm9, %v938_v28, 8 }
 0x511   :  { %v237_v61 = vsel %vm116_vm2, %v236_v60, 2147483647 }
 0x512   :  { %v238_v62 = vrot.slane %v237_v61, 4 }
 0x514   :  { %vm239_vm10 = vcmp.lt.s32.totalorder %v237_v61, %v238_v62 }
 0x515   :  { %v240_v63 = vsel %vm239_vm10, %v237_v61, %v238_v62 }
 0x516   :  { %v241_v0 = vrot.slane %v240_v63, 2 }
 0x518   :  { %vm242_vm11 = vcmp.lt.s32.totalorder %v240_v63, %v241_v0 }
 0x519   :  { %v243_v3 = vsel %vm242_vm11, %v240_v63, %v241_v0 }
 0x51a   :  { %v244_v5 = vrot.slane %v243_v3, 1 }
 0x51c   :  { %vm245_vm12 = vcmp.lt.s32.totalorder %v243_v3, %v244_v5 }
 0x51d   :  { %v246_v6 = vsel %vm245_vm12, %v243_v3, %v244_v5  ;;  %vm49_vm12 = vcmp.eq.s32.totalorder %v938_v28, %v944_v30 }
 0x51e   :  { %vm247_vm13 = vcmp.eq.s32.totalorder %v938_v28, %v246_v6  ;;  %v50_v3 = vsel %vm49_vm12, 1.0, %v867_v1 }
 0x51f   :  { %v249_v7 = vsel %vm247_vm13, -1e+30, %v227_v52  ;;  %v248_v45 = vsel %vm247_vm13, 1.0, %v226_v44  ;;  %v359_v5 = vpack.c.bf16 %v50_v3, %v50_v3  ;;  %vm415_vm13 = vcmask 15360  }
 0x520   :  { %v250_v8 = vsel %vm116_vm2, %v249_v7, -inf }
 0x521   :  { %v251_v9 = vrot.slane %v250_v8, 4 }
 0x523   :  { %v252_v10 = vmax.f32 %v250_v8, %v251_v9  ;;  %v361_v9 = vsel %vm116_vm2, %v359_v5, 0 }
 0x525   :  { %v253_v11 = vrot.slane %v252_v10, 2 }
 0x527   :  { %v254_v12 = vmax.f32 %v252_v10, %v253_v11 }
 0x529   :  { %v255_v13 = vrot.slane %v254_v12, 1 }
 0x52b   :  { %v256_v14 = vmax.f32 %v254_v12, %v255_v13 }
 0x52d   :  { %vm257_vm14 = vcmp.eq.f32.partialorder %v249_v7, %v256_v14 }
 0x52e   :  { %v258_v15 = vsel %vm257_vm14, %v938_v28, 8  ;;  %vm592_vm14 = vcmask 57344  }
 0x52f   :  { %v259_v16 = vsel %vm116_vm2, %v258_v15, 2147483647 }
 0x530   :  { %v260_v17 = vrot.slane %v259_v16, 4 }
 0x532   :  { %vm261_vm15 = vcmp.lt.s32.totalorder %v259_v16, %v260_v17 }
 0x533   :  { %v262_v18 = vsel %vm261_vm15, %v259_v16, %v260_v17  ;;  %v25_v16 = vld [vmem:[%s1083_s3] sm:$0xff]  ;;  %vm686_vm15 = vcmask 7168  }
 0x534   :  { %v263_v19 = vrot.slane %v262_v18, 2 }
 0x536   :  { %vm264_vm3 = vcmp.lt.s32.totalorder %v262_v18, %v263_v19 }
 0x537   :  { %v265_v20 = vsel %vm264_vm3, %v262_v18, %v263_v19 }
 0x538   :  { %v266_v21 = vrot.slane %v265_v20, 1 }
 0x53a   :  { %vm267_vm4 = vcmp.lt.s32.totalorder %v265_v20, %v266_v21 }
 0x53b   :  { %v268_v22 = vsel %vm267_vm4, %v265_v20, %v266_v21 }
 0x53c   :  { %vm269_vm5 = vcmp.eq.s32.totalorder %v938_v28, %v268_v22 }
 0x53d   :  { %v271_v23 = vsel %vm269_vm5, -1e+30, %v249_v7  ;;  %v270_v47 = vsel %vm269_vm5, 1.0, %v248_v45 }
 0x53e   :  { %v272_v24 = vsel %vm116_vm2, %v271_v23, -inf }
 0x53f   :  { %v273_v25 = vrot.slane %v272_v24, 4 }
 0x541   :  { %v274_v26 = vmax.f32 %v272_v24, %v273_v25 }
 0x543   :  { %v275_v31 = vrot.slane %v274_v26, 2 }
 0x545   :  { %v276_v32 = vmax.f32 %v274_v26, %v275_v31 }
 0x547   :  { %v277_v33 = vrot.slane %v276_v32, 1 }
 0x549   :  { %v278_v35 = vmax.f32 %v276_v32, %v277_v33 }
 0x54b   :  { %vm279_vm6 = vcmp.eq.f32.partialorder %v271_v23, %v278_v35 }
 0x54c   :  { %v280_v37 = vsel %vm279_vm6, %v938_v28, 8 }
 0x54d   :  { %v281_v38 = vsel %vm116_vm2, %v280_v37, 2147483647 }
 0x54e   :  { %v282_v39 = vrot.slane %v281_v38, 4 }
 0x550   :  { %vm283_vm7 = vcmp.lt.s32.totalorder %v281_v38, %v282_v39 }
 0x551   :  { %v284_v40 = vsel %vm283_vm7, %v281_v38, %v282_v39 }
 0x552   :  { %v285_v41 = vrot.slane %v284_v40, 2 }
 0x554   :  { %vm286_vm9 = vcmp.lt.s32.totalorder %v284_v40, %v285_v41 }
 0x555   :  { %v287_v42 = vsel %vm286_vm9, %v284_v40, %v285_v41 }
 0x556   :  { %v288_v43 = vrot.slane %v287_v42, 1 }
 0x558   :  { %vm289_vm10 = vcmp.lt.s32.totalorder %v287_v42, %v288_v43 }
 0x559   :  { %v290_v46 = vsel %vm289_vm10, %v287_v42, %v288_v43 }
 0x55a   :  { %vm291_vm11 = vcmp.eq.s32.totalorder %v938_v28, %v290_v46 }
 0x55b   :  { %v992_v48 = vsel %vm291_vm11, 1.0, %v270_v47 }
 0x55c   :  { %v293_v49 = vmul.f32 %v992_v48, %v953_v36  ;;  %v317_v36 = vsel %vm316_vm8, %v909_v2, 0  ;;  %v404_v2 = vmul.f32 0.99, %v921_v4 }
 0x55d   :  { %753 = vmatpush3.bf16.msra.mxu1 %v317_v36 }
 0x55e   :  { %v294_v50 = vand.u32 2147483647, %v293_v49  ;;  %758 = vmatprep.subr.bf16.mxu1 %v867_v1 }
 0x560   :  { %v295_v52 = vsel %vm116_vm2, %v294_v50, 0.0 }
 0x561   :  { %v296_v51 = vrot.slane %v295_v52, 4 }
 0x563   :  { %v297_v53 = vadd.f32 %v296_v51, %v295_v52 }
 0x565   :  { %v298_v54 = vrot.slane %v297_v53, 2 }
 0x567   :  { %v299_v55 = vadd.f32 %v298_v54, %v297_v53 }
 0x569   :  { %v300_v56 = vrot.slane %v299_v55, 1 }
 0x56b   :  { %v301_v57 = vadd.f32 %v300_v56, %v299_v55 }
 0x56d   :  { %v302_v58 = vmax.f32 %v301_v57, 1e-12 }
 0x56f   :  { %809 = vrcp.f32 %v302_v58 }
 0x579   :  { %v810_v59 = vpop.eup %809 }
 0x57a   :  { %v304_v60 = vmul.f32 %v810_v59, %v293_v49 }
 0x57c   :  { %v305_v61 = vand.u32 2147483647, %v304_v60 }
 0x57e   :  { %v306_v62 = vsel %vm116_vm2, %v305_v61, 0.0 }
 0x57f   :  { %307 = vadd.xlane.f32.xlu1 %v306_v62 }
 0x60c   :  { %v308_v63 = vpop.xlane.xlu1 %307 }
 0x60d   :  { %v309_v0 = vmax.f32 %v308_v63, 1e-12 }
 0x60f   :  { %811 = vrcp.f32 %v309_v0  ;;  %v1029_v0 = vand.u32 127, %v27_v27 }
 0x611   :  { %v55_v3 = vand.u32 1, %v1029_v0  ;;  %vm702_vm3 = vcmp.eq.s32.totalorder %v1029_v0, 1  ;;  %vm701_vm4 = vcmp.eq.s32.totalorder %v1029_v0, 0 }
 0x619   :  { %v812_v6 = vpop.eup %811 }
 0x61a   :  { %v311_v7 = vmul.f32 %v812_v6, %v304_v60 }
 0x61c   :  { %v312_v8 = vpack.c.bf16 %v311_v7, %v311_v7 }
 0x61e   :  { %755 = vmatmul.mubr.msk.bf16.vlgmr.msra.gmra.mrb[0].mxu1 %vm116_vm2, %v312_v8 }
 0x61f   :  { %759 = vmatpush3.bf16.xpose.msra.mxu1 %v361_v9  ;;  %760 = vmatprep.mubr.msk.bf16.mxu1 %vm868_vm1, %v867_v1 }
 0x620   :  { %770 = vmatprep.subr.bf16.mxu1 %v867_v1 }
 0x626   :  { %761 = vmatmul.mubr.msk.bf16.vlgmr.msra.gmra.mrb[4].mxu1 %vm116_vm2, %v312_v8 }
 0x627   :  { %772 = vmatprep.mubr.msk.bf16.mxu1 %vm868_vm1, %v867_v1  ;;  %vm65_vm1 = vcmp.ne.s32.totalorder %v938_v28, %v1029_v0 }
 0x628   :  { %v1038_v7 = vsel %vm65_vm1, 1.0, %v867_v1 }
 0x6f1   :  { %v353_v30 = vpop.f32.mrb[0].mxu1 }
 0x6f2   :  { %v405_v10 = vmul.f32 0.01, %v353_v30  ;;  %v756_v11 = vpop.f32.mrb[1].mxu1 }
 0x6f3   :  { %v356_v12 = vpop.f32.mrb[2].mxu1 }
 0x6f4   :  { %v406_v13 = vadd.f32 %v405_v10, %v404_v2  ;;  %v757_v14 = vpop.f32.mrb[3].mxu1 }
 0x6f6   :  { %v407_v15 = vmul.f32 %v406_v13, %v406_v13 }
 0x6f8   :  { %v408_v17 = vsel %vm68_vm0, %v407_v15, 0.0 }
 0x6f9   :  { %409 = vadd.xlane.f32.xlu0 %v408_v17  ;;  %v397_v18 = vpop.f32.mrb[4].mxu1 }
 0x6fa   :  { %v403_v19 = vadd.f32 %v397_v18, %v25_v16  ;;  %v762_v20 = vpop.f32.mrb[5].mxu1 }
 0x6fb   :  { %v400_v21 = vpop.f32.mrb[6].mxu1 }
 0x6fc   :  { %416 = vst.msk [vmem:[%s1085_s5] sm:$0xff] %vm415_vm13, %v403_v19  ;;  %v763_v4 = vpop.f32.mrb[7].mxu1 }
 0x786   :  { %v410_v22 = vpop.xlane.xlu0 %409 }
 0x787   :  { %v411_v23 = vmax.f32 %v410_v22, 1e-24 }
 0x789   :  { %813 = vrsqrt.f32 %v411_v23 }
 0x793   :  { %v814_v24 = vpop.eup %813 }
 0x794   :  { %v413_v25 = vmul.f32 %v814_v24, %v406_v13 }
 0x796   :  { %414 = vst.msk [vmem:[%s1084_s4] sm:$0xff] %vm68_vm0, %v413_v25  ;;  %v417_v26 = vpack.c.bf16 %v413_v25, %v413_v25 }
 0x798   :  { %767 = vmatmul.mubr.msk.bf16.vlgmr.msra.gmra.mrb[4].mxu0 %vm68_vm0, %v417_v26  ;;  %v419_v31 = vsel %vm68_vm0, %v417_v26, 0 }
 0x799   :  { %771 = vmatpush3.bf16.xpose.msra.mxu1 %v419_v31 }
 0x7a0   :  { %773 = vmatmul.mubr.msk.bf16.vlgmr.msra.gmra.mrb[8].mxu1 %vm68_vm0, %v417_v26  ;;  %vm63_vm0 = vcmp.eq.s32.totalorder %v35_v29, %v55_v3 }
 0x7a1   :  { %v64_v6 = vsel %vm63_vm0, 1.0, %v867_v1 }
 0x7a2   :  { %v665_v27 = vmul.f32 %v1038_v7, %v64_v6 }
 0x7a4   :  { %v666_v10 = vand.u32 2147483647, %v665_v27 }
 0x7a6   :  { %v667_v28 = vsel %vm116_vm2, %v666_v10, 0.0 }
 0x86b   :  { %v455_v32 = vpop.f32.mrb[4].mxu0 }
 0x86c   :  { %v461_v33 = vmul.f32 20.0, %v455_v32  ;;  %v768_v35 = vpop.f32.mrb[5].mxu0  ;;  %v1044_v11 = vmul.f32 10.0, %v455_v32 }
 0x86d   :  { %v458_v37 = vpop.f32.mrb[6].mxu0 }
 0x86e   :  { %v769_v38 = vpop.f32.mrb[7].mxu0  ;;  %v462_v39 = vsel %vm116_vm2, %v461_v33, -inf  ;;  %v572_v1 = vsel %vm116_vm2, %v1044_v11, -inf }
 0x86f   :  { %463 = vmax.xlane.f32.xlu1 %v462_v39  ;;  %v573_v12 = vrot.slane %v572_v1, 4 }
 0x871   :  { %v574_v13 = vmax.f32 %v572_v1, %v573_v12 }
 0x873   :  { %v654_v40 = vpop.f32.mrb[8].mxu1  ;;  %v575_v14 = vrot.slane %v574_v13, 2 }
 0x874   :  { %v774_v41 = vpop.f32.mrb[9].mxu1  ;;  %v660_v2 = vmul.f32 2.0, %v654_v40 }
 0x875   :  { %v657_v42 = vpop.f32.mrb[10].mxu1  ;;  %v576_v15 = vmax.f32 %v574_v13, %v575_v14 }
 0x876   :  { %v775_v43 = vpop.f32.mrb[11].mxu1  ;;  %v661_v29 = vsel %vm116_vm2, %v660_v2, -inf }
 0x877   :  { %v577_v16 = vrot.slane %v576_v15, 1 }
 0x879   :  { %v578_v17 = vmax.f32 %v576_v15, %v577_v16 }
 0x87b   :  { %v579_v18 = vsub.f32 %v1044_v11, %v578_v17 }
 0x87d   :  { %v580_v19 = vmul.f32 1.442695, %v579_v18 }
 0x8fc   :  { %v464_v44 = vpop.xlane.xlu1 %463 }
 0x8fd   :  { %v465_v45 = vrot.slane %v464_v44, 4 }
 0x8ff   :  { %v466_v46 = vmax.f32 %v464_v44, %v465_v45 }
 0x901   :  { %v467_v47 = vrot.slane %v466_v46, 2 }
 0x903   :  { %v468_v49 = vmax.f32 %v466_v46, %v467_v47 }
 0x905   :  { %v469_v50 = vrot.slane %v468_v49, 1 }
 0x907   :  { %v470_v52 = vmax.f32 %v468_v49, %v469_v50 }
 0x909   :  { %780 = vpush %v470_v52 }
 0x93a   :  { %s781_s4 = spop %780 }
 0x93b   :  { %v472_v51 = vstv %s781_s4 }
 0x93c   :  { %v473_v53 = vsub.f32 %v461_v33, %v472_v51 }
 0x93e   :  { %v474_v54 = vmul.f32 1.442695, %v473_v53 }
 0x940   :  { %815 = vpow2.f32 %v474_v54 }
 0x94a   :  { %v816_v55 = vpop.eup %815 }
 0x94b   :  { %v476_v56 = vsel %vm116_vm2, %v816_v55, 0.0 }
 0x94c   :  { %477 = vadd.xlane.f32.xlu0 %v476_v56 }
 0x9d9   :  { %v478_v57 = vpop.xlane.xlu0 %477 }
 0x9da   :  { %v479_v58 = vrot.slane %v478_v57, 4 }
 0x9dc   :  { %v480_v59 = vadd.f32 %v479_v58, %v478_v57 }
 0x9de   :  { %v481_v60 = vrot.slane %v480_v59, 2 }
 0x9e0   :  { %v482_v61 = vadd.f32 %v481_v60, %v480_v59 }
 0x9e2   :  { %v483_v62 = vrot.slane %v482_v61, 1 }
 0x9e4   :  { %v484_v36 = vadd.f32 %v483_v62, %v482_v61 }
 0x9e6   :  { %782 = vpush %v484_v36 }
 0xa17   :  { %s783_s5 = spop %782 }
 0xa18   :  { %v486_v63 = vstv %s783_s5 }
 0xa19   :  { %817 = vrcp.f32 %v486_v63 }
 0xa1a   :  { %819 = vpow2.f32 %v580_v19 }
 0xa23   :  { %v818_v5 = vpop.eup %817 }
 0xa24   :  { %v488_v8 = vmul.f32 %v818_v5, %v816_v55  ;;  %v820_v20 = vpop.eup %819 }
 0xa25   :  { %v582_v21 = vsel %vm116_vm2, %v820_v20, 0.0 }
 0xa26   :  { %v489_v9 = vand.u32 2147483647, %v488_v8  ;;  %v583_v4 = vrot.slane %v582_v21, 4 }
 0xa28   :  { %v490_v30 = vsel %vm116_vm2, %v489_v9, 0.0  ;;  %v584_v22 = vadd.f32 %v583_v4, %v582_v21 }
 0xa29   :  { %491 = vadd.xlane.f32.xlu1 %v490_v30 }
 0xa2a   :  { %v585_v23 = vrot.slane %v584_v22, 2 }
 0xa2c   :  { %v586_v24 = vadd.f32 %v585_v23, %v584_v22 }
 0xa2d   :  { %662 = vmax.xlane.f32.xlu1 %v661_v29 }
 0xa2e   :  { %v587_v31 = vrot.slane %v586_v24, 1 }
 0xa30   :  { %v588_v33 = vadd.f32 %v587_v31, %v586_v24 }
 0xa31   :  { %668 = vadd.xlane.f32.xlu1 %v667_v28 }
 0xab6   :  { %v492_v25 = vpop.xlane.xlu1 %491 }
 0xab7   :  { %v493_v26 = vmax.f32 %v492_v25, 1e-12 }
 0xab9   :  { %821 = vrcp.f32 %v493_v26 }
 0xaba   :  { %v663_v32 = vpop.xlane.xlu1 %662  ;;  %823 = vlog2.f32 %v588_v33 }
 0xabb   :  { %v664_v46 = vsub.f32 %v660_v2, %v663_v32 }
 0xabd   :  { %v677_v14 = vmul.f32 1.442695, %v664_v46 }
 0xabe   :  { %v669_v35 = vpop.xlane.xlu1 %668 }
 0xabf   :  { %v670_v37 = vmax.f32 %v669_v35, 1e-12 }
 0xac1   :  { %825 = vrcp.f32 %v670_v37 }
 0xac3   :  { %v822_v38 = vpop.eup %821 }
 0xac4   :  { %v495_v39 = vmul.f32 %v822_v38, %v488_v8  ;;  %v824_v42 = vpop.eup %823 }
 0xac5   :  { %v590_v49 = vmul.f32 0.6931472, %v824_v42 }
 0xac6   :  { %v496_v40 = vmul.f32 0.125, %v495_v39 }
 0xac7   :  { %v591_v54 = vadd.f32 %v590_v49, %v578_v17 }
 0xac8   :  { %v497_v41 = vand.u32 2147483647, %v496_v40 }
 0xac9   :  { %v606_v57 = vsel %vm592_vm14, %v591_v54, 0.0 }
 0xaca   :  { %v498_v43 = vsel %vm116_vm2, %v497_v41, 0.0 }
 0xacb   :  { %v826_v44 = vpop.eup %825  ;;  %v499_v45 = vrot.slane %v498_v43, 4 }
 0xacc   :  { %v672_v47 = vmul.f32 %v826_v44, %v665_v27 }
 0xacd   :  { %v500_v50 = vadd.f32 %v499_v45, %v498_v43 }
 0xace   :  { %v673_v52 = vmul.f32 %v672_v47, %v664_v46 }
 0xacf   :  { %v501_v51 = vrot.slane %v500_v50, 2 }
 0xad0   :  { %v674_v53 = vsel %vm116_vm2, %v673_v52, 0.0 }
 0xad1   :  { %675 = vadd.xlane.f32.xlu1 %v674_v53  ;;  %v502_v55 = vadd.f32 %v501_v51, %v500_v50 }
 0xad3   :  { %v503_v56 = vrot.slane %v502_v55, 1 }
 0xad5   :  { %607 = vadd.xlane.f32.xlu1 %v606_v57  ;;  %v504_v58 = vadd.f32 %v503_v56, %v502_v55 }
 0xad7   :  { %v505_v59 = vmax.f32 %v504_v58, 1e-12 }
 0xad9   :  { %827 = vrcp.f32 %v505_v59 }
 0xae3   :  { %v828_v60 = vpop.eup %827 }
 0xae4   :  { %v507_v61 = vmul.f32 %v828_v60, %v496_v40 }
 0xae6   :  { %v508_v62 = vmul.f32 0.125, %v507_v61 }
 0xae8   :  { %v509_v36 = vand.u32 2147483647, %v508_v62 }
 0xaea   :  { %v510_v63 = vsel %vm116_vm2, %v509_v36, 0.0 }
 0xaeb   :  { %511 = vadd.xlane.f32.xlu0 %v510_v63 }
 0xb78   :  { %v512_v3 = vpop.xlane.xlu0 %511 }
 0xb79   :  { %v513_v5 = vmax.f32 %v512_v3, 1e-12 }
 0xb7b   :  { %829 = vrcp.f32 %v513_v5 }
 0xb85   :  { %v830_v6 = vpop.eup %829 }
 0xb86   :  { %v515_v8 = vmul.f32 %v830_v6, %v508_v62 }
 0xb88   :  { %v516_v9 = vmul.f32 0.125, %v515_v8  ;;  %v676_v8 = vpop.xlane.xlu1 %675 }
 0xb8a   :  { %v517_v27 = vand.u32 2147483647, %v516_v9 }
 0xb8c   :  { %v518_v2 = vsel %vm116_vm2, %v517_v27, 0.0 }
 0xb8d   :  { %v519_v30 = vrot.slane %v518_v2, 4 }
 0xb8f   :  { %v520_v10 = vadd.f32 %v519_v30, %v518_v2  ;;  %v608_v30 = vpop.xlane.xlu1 %607 }
 0xb91   :  { %v521_v29 = vrot.slane %v520_v10, 2 }
 0xb93   :  { %v522_v28 = vadd.f32 %v521_v29, %v520_v10 }
 0xb95   :  { %v523_v1 = vrot.slane %v522_v28, 1 }
 0xb97   :  { %v524_v12 = vadd.f32 %v523_v1, %v522_v28 }
 0xb99   :  { %v525_v13 = vmax.f32 %v524_v12, 1e-12 }
 0xb9b   :  { %831 = vrcp.f32 %v525_v13 }
 0xb9c   :  { %833 = vpow2.f32 %v677_v14 }
 0xba5   :  { %v832_v15 = vpop.eup %831 }
 0xba6   :  { %v527_v16 = vmul.f32 %v832_v15, %v516_v9  ;;  %v834_v18 = vpop.eup %833 }
 0xba7   :  { %v679_v21 = vmul.f32 %v834_v18, %v1038_v7 }
 0xba8   :  { %v528_v17 = vmul.f32 0.125, %v527_v16 }
 0xba9   :  { %v680_v4 = vsel %vm116_vm2, %v679_v21, 0.0 }
 0xbaa   :  { %v529_v19 = vand.u32 2147483647, %v528_v17 }
 0xbac   :  { %v530_v20 = vsel %vm116_vm2, %v529_v19, 0.0 }
 0xbad   :  { %531 = vadd.xlane.f32.xlu0 %v530_v20 }
 0xbb1   :  { %681 = vadd.xlane.f32.xlu0 %v680_v4 }
 0xc3a   :  { %v532_v22 = vpop.xlane.xlu0 %531 }
 0xc3b   :  { %v533_v23 = vmax.f32 %v532_v22, 1e-12 }
 0xc3d   :  { %835 = vrcp.f32 %v533_v23 }
 0xc3e   :  { %v682_v57 = vpop.xlane.xlu0 %681 }
 0xc47   :  { %v836_v24 = vpop.eup %835 }
 0xc48   :  { %v535_v25 = vmul.f32 %v836_v24, %v528_v17 }
 0xc4a   :  { %v536_v26 = vmul.f32 0.125, %v535_v25 }
 0xc4c   :  { %v537_v31 = vand.u32 2147483647, %v536_v26 }
 0xc4e   :  { %v538_v32 = vsel %vm116_vm2, %v537_v31, 0.0 }
 0xc4f   :  { %v539_v33 = vrot.slane %v538_v32, 4 }
 0xc51   :  { %v540_v35 = vadd.f32 %v539_v33, %v538_v32 }
 0xc53   :  { %v541_v37 = vrot.slane %v540_v35, 2 }
 0xc55   :  { %v542_v38 = vadd.f32 %v541_v37, %v540_v35 }
 0xc57   :  { %v543_v39 = vrot.slane %v542_v38, 1 }
 0xc59   :  { %v544_v40 = vadd.f32 %v543_v39, %v542_v38 }
 0xc5b   :  { %v545_v7 = vmax.f32 %v544_v40, 1e-12 }
 0xc5d   :  { %837 = vrcp.f32 %v545_v7 }
 0xc67   :  { %v838_v41 = vpop.eup %837 }
 0xc68   :  { %v547_v42 = vmul.f32 %v838_v41, %v536_v26 }
 0xc6a   :  { %v548_v43 = vmul.f32 0.125, %v547_v42 }
 0xc6c   :  { %v549_v44 = vmul.f32 8.0, %v548_v43 }
 0xc6e   :  { %v551_v45 = vmul.f32 %v549_v44, %v950_v34 }
 0xc70   :  { %v552_v46 = vmul.f32 %v551_v45, %v992_v48 }
 0xc72   :  { %v553_v47 = vand.u32 2147483647, %v552_v46 }
 0xc74   :  { %v554_v49 = vsel %vm116_vm2, %v553_v47, 0.0 }
 0xc75   :  { %v555_v50 = vrot.slane %v554_v49, 4 }
 0xc77   :  { %v556_v52 = vadd.f32 %v555_v50, %v554_v49 }
 0xc79   :  { %v557_v51 = vrot.slane %v556_v52, 2 }
 0xc7b   :  { %v558_v53 = vadd.f32 %v557_v51, %v556_v52 }
 0xc7d   :  { %v559_v54 = vrot.slane %v558_v53, 1 }
 0xc7f   :  { %v560_v55 = vadd.f32 %v559_v54, %v558_v53 }
 0xc81   :  { %v561_v56 = vmax.f32 %v560_v55, 1e-12 }
 0xc83   :  { %839 = vrcp.f32 %v561_v56 }
 0xc84   :  { %841 = vlog2.f32 %v682_v57 }
 0xc8d   :  { %v840_v58 = vpop.eup %839 }
 0xc8e   :  { %v563_v59 = vmul.f32 %v840_v58, %v552_v46  ;;  %v842_v36 = vpop.eup %841 }
 0xc8f   :  { %v684_v3 = vmul.f32 0.6931472, %v842_v36 }
 0xc90   :  { %v564_v60 = vmul.f32 %v563_v59, %v1044_v11  ;;  %v609_v11 = vrot.slane %v608_v30, 4 }
 0xc91   :  { %v685_v27 = vsub.f32 %v676_v8, %v684_v3 }
 0xc92   :  { %v565_v34 = vsel %vm116_vm2, %v564_v60, 0.0  ;;  %v610_v10 = vadd.f32 %v609_v11, %v608_v30  ;;  %vm703_vm2 = vcmp.eq.s32.totalorder %v1029_v0, 2 }
 0xc93   :  { %v566_v48 = vrot.slane %v565_v34, 4  ;;  %v687_v2 = vsel %vm686_vm15, %v685_v27, 0.0 }
 0xc94   :  { %v611_v29 = vrot.slane %v610_v10, 2 }
 0xc95   :  { %v567_v61 = vadd.f32 %v566_v48, %v565_v34 }
 0xc96   :  { %v612_v13 = vadd.f32 %v611_v29, %v610_v10 }
 0xc97   :  { %v568_v62 = vrot.slane %v567_v61, 2 }
 0xc98   :  { %v613_v19 = vrot.slane %v612_v13, 1 }
 0xc99   :  { %v569_v63 = vadd.f32 %v568_v62, %v567_v61 }
 0xc9a   :  { %v614_v23 = vadd.f32 %v613_v19, %v612_v13 }
 0xc9b   :  { %v570_v5 = vrot.slane %v569_v63, 1 }
 0xc9d   :  { %v571_v6 = vadd.f32 %v570_v5, %v569_v63 }
 0xc9f   :  { %v593_v9 = vsel %vm592_vm14, %v571_v6, 0.0 }
 0xca0   :  { %594 = vadd.xlane.f32.xlu0 %v593_v9 }
 0xca4   :  { %688 = vadd.xlane.f32.xlu0 %v687_v2 }
 0xd2d   :  { %v595_v28 = vpop.xlane.xlu0 %594 }
 0xd2e   :  { %v596_v1 = vrot.slane %v595_v28, 4 }
 0xd30   :  { %v597_v12 = vadd.f32 %v596_v1, %v595_v28 }
 0xd31   :  { %v689_v14 = vpop.xlane.xlu0 %688 }
 0xd32   :  { %v598_v15 = vrot.slane %v597_v12, 2  ;;  %v690_v16 = vrot.slane %v689_v14, 4 }
 0xd34   :  { %v691_v17 = vadd.f32 %v690_v16, %v689_v14  ;;  %v599_v18 = vadd.f32 %v598_v15, %v597_v12 }
 0xd36   :  { %v692_v20 = vrot.slane %v691_v17, 2  ;;  %v600_v21 = vrot.slane %v599_v18, 1 }
 0xd38   :  { %v693_v4 = vadd.f32 %v692_v20, %v691_v17  ;;  %v601_v22 = vadd.f32 %v600_v21, %v599_v18 }
 0xd3a   :  { %784 = vpush %v601_v22  ;;  %v694_v24 = vrot.slane %v693_v4, 1 }
 0xd3b   :  { %786 = vpush %v614_v23 }
 0xd3c   :  { %v695_v25 = vadd.f32 %v694_v24, %v693_v4 }
 0xd3e   :  { %788 = vpush %v695_v25 }
 0xd6b   :  { %s785_s7 = spop %784 }
 0xd6c   :  { %v603_v26 = vstv %s785_s7  ;;  %s787_s8 = spop %786 }
 0xd6d   :  { %v605_v31 = vmul.f32 0.125, %v603_v26  ;;  %v616_v32 = vstv %s787_s8 }
 0xd6e   :  { %v617_v33 = vmul.f32 0.125, %v616_v32 }
 0xd6f   :  { %s789_s9 = spop %788 }
 0xd70   :  { %v618_v35 = vsub.f32 %v605_v31, %v617_v33  ;;  %v697_v37 = vstv %s789_s9 }
 0xd71   :  { %v698_v38 = vmul.f32 0.125, %v697_v37 }
 0xd72   :  { %v619_v39 = vsub.f32 0.0, %v618_v35 }
 0xd73   :  { %v699_v40 = vsub.f32 0.0, %v698_v38 }
 0xd75   :  { %v700_v7 = vadd.f32 %v699_v40, %v619_v39  ;;  %v704_v41 = vsel %vm703_vm2, %v699_v40, 0.0 }
 0xd76   :  { %v705_v42 = vsel %vm702_vm3, %v619_v39, %v704_v41 }
 0xd77   :  { %v706_v43 = vsel %vm701_vm4, %v700_v7, %v705_v42 }
 0xd78   :  { %707 = vst [vmem:[#allocation2] sm:$0x1] %v706_v43 }
 0xd79   :  { %854 = shalt.err (!%p851_p4)
}
 0xd7a   :  { %s855_s16 = scalar_lea.hbm %s1086_s6, 16 }
 0xd7b   :  { %p856_p5 = scmp.ne.s32.totalorder %s1086_s6, %s855_s16  ;;  %p859_p6 = scmp.lt.u32.totalorder %s855_s16, %s1086_s6 }
 0xd7d   :  { %p861_p7 = pnand %p859_p6, %p856_p5 }
 0xd7f   :  { %864 = shalt.err (!%p861_p7)
}
 0xd80   :  { %721 = dma.vmem_to_hbm [thread:$0]  %s719_s11, 16, %s1086_s6, [#allocation3]  }
 0xd81   :  { %865 = dma.done.wait [#allocation3], 16  }
 0xd82   :  { %866 = vsyncadd [#allocation3], 4294967280 }
 0xd83   :  { %729 = vsyncpa [#allocation3], 1 }

</bundles_post_ra>
